<compile_context>
chip_gen: v7x
topology: tpu7x:2x2x1
jax: 0.10.0
libtpu: 0.0.40
codegen_flags: <defaults>
</compile_context>

<pallas_src>
import functools

import jax
import jax.numpy as jnp
import numpy as np
from jax.experimental import pallas as pl
from jax.experimental.pallas import tpu as pltpu


def _ceil_to(x, m):
    return ((x + m - 1) // m) * m


def lstm_chunk_kernel(tok_ref, glut_ref, whh_ref, h_ref, c_ref, xg_ref,
                      *, tc, bt, t_total, hp, vp):
    """One grid step = one (batch-tile, time-chunk) slice of the LSTM recurrence."""
    ti = pl.program_id(1)

    @pl.when(ti == 0)
    def _():
        h_ref[...] = jnp.zeros_like(h_ref)   # output block doubles as running h
        c_ref[...] = jnp.zeros_like(c_ref)

    g4 = 4 * hp
    rows = tc * bt

    # Fused embedding lookup + input projection, hoisted for the whole chunk:
    # one-hot(tokens) @ G with G[v] = emb[v] @ W_ih^T + b.  Single MXU matmul per
    # chunk; the result is staged in VMEM scratch so the unrolled time loop only
    # keeps h/c and one gate tile in vregs.
    tok = tok_ref[...]                                               # (rows, 1) int32
    vocab_iota = jax.lax.broadcasted_iota(jnp.int32, (rows, vp), 1)
    onehot = (tok == vocab_iota).astype(jnp.float32)                 # (rows, vp)
    xg_ref[...] = jnp.dot(onehot, glut_ref[...],
                          preferred_element_type=jnp.float32)        # (rows, 4*HP)

    h = h_ref[...]
    c = c_ref[...]

    needs_mask = (t_total % tc) != 0
    tail_start = t_total % tc
    last_ti = pl.num_programs(1) - 1

    for t in range(tc):                     # fully unrolled in-kernel time loop
        xg_t = xg_ref[pl.ds(t * bt, bt), :]                          # (bt, 4*HP)
        gates = xg_t + jnp.dot(h, whh_ref[...],
                               preferred_element_type=jnp.float32)
        # PyTorch gate order [i, f, g, o]; each slice is a full 128-lane block.
        i_g = jax.nn.sigmoid(gates[:, 0 * hp:1 * hp])
        f_g = jax.nn.sigmoid(gates[:, 1 * hp:2 * hp])
        g_g = jnp.tanh(gates[:, 2 * hp:3 * hp])
        o_g = jax.nn.sigmoid(gates[:, 3 * hp:4 * hp])
        c_new = f_g * c + i_g * g_g
        h_new = o_g * jnp.tanh(c_new)
        if needs_mask and t >= tail_start:
            # Only the final chunk's tail can be padding; earlier timesteps never
            # pay the selects.
            keep = ti != last_ti
            c = jnp.where(keep, c_new, c)
            h = jnp.where(keep, h_new, h)
        else:
            c, h = c_new, h_new

    h_ref[...] = h
    c_ref[...] = c


def encoder_forward(tokens, emb_table, w_ih, w_hh, b_ih, b_hh, *, t_chunk=32):
    """tokens: (B, T) int32. Returns final hidden state (B, H), i.e. h.squeeze(0)."""
    B, T = tokens.shape
    V1, E = emb_table.shape            # vocab_size + 1, emb_dim
    H = w_hh.shape[1]

    HP = _ceil_to(H, 128)              # lane-aligned hidden (4*HP multiple of 512)
    BT = 8                             # batch tile = one sublane group
    BP = _ceil_to(B, BT)
    VP = _ceil_to(V1, 8)               # sublane-aligned LUT rows
    TC = min(_ceil_to(t_chunk, 8), _ceil_to(T, 8))   # chunk multiple of 8
    TP = _ceil_to(T, TC)
    n_bt = BP // BT
    n_tc = TP // TC
    G4 = 4 * HP

    f32 = jnp.float32

    # Per-gate zero-padded weights (padded h/c lanes provably stay exactly 0).
    w_ih_p = jnp.zeros((4, HP, E), f32).at[:, :H, :].set(
        w_ih.reshape(4, H, E).astype(f32))
    w_hh_p = jnp.zeros((4, HP, HP), f32).at[:, :H, :H].set(
        w_hh.reshape(4, H, H).astype(f32))
    bias = jnp.zeros((4, HP), f32).at[:, :H].set(
        (b_ih + b_hh).reshape(4, H).astype(f32)).reshape(1, G4)

    whh_t = w_hh_p.reshape(G4, HP).T                              # (HP, 4*HP)

    # Fused embedding + input-projection LUT: G[v] = emb[v] @ W_ih^T + b.
    # Row 0 of emb is zero (padding_idx=0) -> G[0] = bias, as required.
    g_lut = jnp.zeros((VP, G4), f32).at[:V1, :].set(
        jnp.dot(emb_table.astype(f32), w_ih_p.reshape(G4, E).T,
                precision=jax.lax.Precision.HIGHEST) + bias)

    # Tokens: pad to (BP, TP) with token 0, then lay out as a column so that row
    # [bi*TP*BT + t*BT + b] holds (batch-tile bi, timestep t, row b).  Each chunk's
    # block is then already in the (t-major, batch-minor) order the kernel's one-hot
    # matmul consumes -> no in-kernel relayout.
    tok_p = jnp.zeros((BP, TP), jnp.int32).at[:B, :T].set(tokens.astype(jnp.int32))
    tok_col = tok_p.reshape(n_bt, BT, TP).transpose(0, 2, 1).reshape(n_bt * TP * BT, 1)

    kernel = functools.partial(lstm_chunk_kernel,
                               tc=TC, bt=BT, t_total=T, hp=HP, vp=VP)

    h_pad = pl.pallas_call(
        kernel,
        out_shape=jax.ShapeDtypeStruct((BP, HP), f32),
        grid_spec=pltpu.PrefetchScalarGridSpec(
            num_scalar_prefetch=0,
            grid=(n_bt, n_tc),
            in_specs=[
                # int32 token ids for this (batch-tile, chunk): 4 B/token streamed.
                pl.BlockSpec((TC * BT, 1), lambda bi, ti: (bi * n_tc + ti, 0)),
                # Constant operands (VMEM-resident; re-fetch skipped across grid).
                pl.BlockSpec((VP, G4), lambda bi, ti: (0, 0)),    # emb@W_ih^T + b LUT
                pl.BlockSpec((HP, G4), lambda bi, ti: (0, 0)),    # W_hh^T
            ],
            # Constant block index over the time axis -> output stays VMEM-resident
            # and serves as the running h state (review: drop the h scratch).
            out_specs=pl.BlockSpec((BT, HP), lambda bi, ti: (bi, 0)),
            scratch_shapes=[
                pltpu.VMEM((BT, HP), f32),          # c state (persists across chunks)
                pltpu.VMEM((TC * BT, G4), f32),     # staged per-chunk gate pre-acts
            ],
        ),
        compiler_params=pltpu.CompilerParams(
            # batch tiles independent (megacore-shardable); recurrence sequential.
            dimension_semantics=("parallel", "arbitrary")),
    )(tok_col, g_lut, whh_t)

    return h_pad[:B, :H]


def lstm_reference(tokens, emb_table, w_ih, w_hh, b_ih, b_hh):
    """Pure-JAX reference reproducing torch.nn.LSTM (batch_first) final h."""
    x = jnp.take(emb_table, tokens, axis=0)          # (B, T, E)
    B, T, E = x.shape
    H = w_hh.shape[1]
    h = jnp.zeros((B, H), jnp.float32)
    c = jnp.zeros((B, H), jnp.float32)
    for t in range(T):
        gates = (x[:, t, :] @ w_ih.T + h @ w_hh.T + b_ih + b_hh)
        i_g = jax.nn.sigmoid(gates[:, 0 * H:1 * H])
        f_g = jax.nn.sigmoid(gates[:, 1 * H:2 * H])
        g_g = jnp.tanh(gates[:, 2 * H:3 * H])
        o_g = jax.nn.sigmoid(gates[:, 3 * H:4 * H])
        c = f_g * c + i_g * g_g
        h = o_g * jnp.tanh(c)
    return h


if __name__ == "__main__":
    # Module hyperparameters (small, consistent with Encoder defaults).
    vocab_size = 20
    emb_dim = 64
    hidden_dim = 32
    batch = 2
    seq = 8

    key = jax.random.PRNGKey(0)
    k_emb, k_wih, k_whh, k_bih, k_bhh, k_tok = jax.random.split(key, 6)

    # Embedding table: (vocab_size + 1, emb_dim), row 0 zeroed (padding_idx=0).
    emb_table = jax.random.normal(k_emb, (vocab_size + 1, emb_dim), jnp.float32)
    emb_table = emb_table.at[0].set(0.0)

    # LSTM params, PyTorch-style uniform(-1/sqrt(H), 1/sqrt(H)), gate order [i,f,g,o].
    bound = 1.0 / np.sqrt(hidden_dim)
    w_ih = jax.random.uniform(k_wih, (4 * hidden_dim, emb_dim), jnp.float32, -bound, bound)
    w_hh = jax.random.uniform(k_whh, (4 * hidden_dim, hidden_dim), jnp.float32, -bound, bound)
    b_ih = jax.random.uniform(k_bih, (4 * hidden_dim,), jnp.float32, -bound, bound)
    b_hh = jax.random.uniform(k_bhh, (4 * hidden_dim,), jnp.float32, -bound, bound)

    # Tokens in [0, vocab_size], including some padding zeros.
    tokens = jax.random.randint(k_tok, (batch, seq), 0, vocab_size + 1, jnp.int32)
    tokens = tokens.at[:, -1].set(0)  # exercise padding_idx row

    h_kernel = encoder_forward(tokens, emb_table, w_ih, w_hh, b_ih, b_hh)
    h_kernel = jax.block_until_ready(h_kernel)

    h_ref = lstm_reference(tokens, emb_table, w_ih, w_hh, b_ih, b_hh)
    np.testing.assert_allclose(np.asarray(h_kernel), np.asarray(h_ref),
                               rtol=2e-3, atol=2e-3)
    assert h_kernel.shape == (batch, hidden_dim)
    print("KERNEL_OK")
</pallas_src>

<mosaic_0001>
module attributes {stable_mosaic.version = 11 : i64} {
  func.func @lstm_chunk_kernel(%arg0: i32, %arg1: i32, %arg2: memref<64x1xi32, #tpu.memory_space<vmem>>, %arg3: memref<24x512xf32, #tpu.memory_space<vmem>>, %arg4: memref<128x512xf32, #tpu.memory_space<vmem>>, %arg5: memref<8x128xf32, #tpu.memory_space<vmem>>, %arg6: memref<8x128xf32, #tpu.memory_space<vmem>>, %arg7: memref<64x512xf32, #tpu.memory_space<vmem>>) attributes {dimension_semantics = [#tpu.dimension_semantics<parallel>, #tpu.dimension_semantics<arbitrary>], iteration_bounds = array<i64: 1, 1>, scalar_prefetch = 0 : i64, scratch_operands = 2 : i64, tpu.core_type = #tpu.core_type<tc>, window_params = [{transform_indices = @transform_0, window_bounds = array<i64: 64, 1>}, {pipeline_mode = #tpu.pipeline_mode<synchronous>, transform_indices = @transform_1, window_bounds = array<i64: 24, 512>}, {pipeline_mode = #tpu.pipeline_mode<synchronous>, transform_indices = @transform_2, window_bounds = array<i64: 128, 512>}, {transform_indices = @transform_3, window_bounds = array<i64: 8, 128>}]} {
    %c0_i32 = arith.constant 0 : i32
    %0 = arith.cmpi eq, %arg1, %c0_i32 : i32
    %1 = arith.extui %0 : i1 to i32
    %c0_i32_0 = arith.constant 0 : i32
    %2 = arith.cmpi ne, %1, %c0_i32_0 : i32
    scf.if %2 {
      %cst_71 = arith.constant 0.000000e+00 : f32
      %248 = vector.broadcast %cst_71 : f32 to vector<8x128xf32>
      %c0_72 = arith.constant 0 : index
      %c0_73 = arith.constant 0 : index
      %249 = vector.load %arg5[%c0_72, %c0_73] : memref<8x128xf32, #tpu.memory_space<vmem>>, vector<8x128xf32>
      tpu.vector_store %arg5[%c0_72, %c0_73], %248 {strides = array<i32>} : memref<8x128xf32, #tpu.memory_space<vmem>>, vector<8x128xf32>,
      %cst_74 = arith.constant 0.000000e+00 : f32
      %250 = vector.broadcast %cst_74 : f32 to vector<8x128xf32>
      %c0_75 = arith.constant 0 : index
      %c0_76 = arith.constant 0 : index
      %251 = vector.load %arg6[%c0_75, %c0_76] : memref<8x128xf32, #tpu.memory_space<vmem>>, vector<8x128xf32>
      tpu.vector_store %arg6[%c0_75, %c0_76], %250 {strides = array<i32>} : memref<8x128xf32, #tpu.memory_space<vmem>>, vector<8x128xf32>,
    } else {
    }
    %c0 = arith.constant 0 : index
    %c0_1 = arith.constant 0 : index
    %3 = vector.load %arg2[%c0, %c0_1] : memref<64x1xi32, #tpu.memory_space<vmem>>, vector<64x1xi32>
    %4 = tpu.iota {dimensions = array<i32: 1>} : vector<64x24xi32>
    %5 = vector.broadcast %3 : vector<64x1xi32> to vector<64x24xi32>
    %6 = arith.cmpi eq, %5, %4 : vector<64x24xi32>
    %7 = arith.extui %6 : vector<64x24xi1> to vector<64x24xi32>
    %8 = arith.sitofp %7 : vector<64x24xi32> to vector<64x24xf32>
    %c0_2 = arith.constant 0 : index
    %c0_3 = arith.constant 0 : index
    %9 = vector.load %arg3[%c0_2, %c0_3] : memref<24x512xf32, #tpu.memory_space<vmem>>, vector<24x512xf32>
    %cst = arith.constant dense<0.000000e+00> : vector<64x512xf32>
    %10 = tpu.matmul %8, %9, %cst {dimension_numbers = #tpu.dot_dimension_numbers<[1], [0], [0], [1], [0, 0, 1, 1], [], []>} : vector<64x24xf32>, vector<24x512xf32>, vector<64x512xf32> -> vector<64x512xf32>
    %c0_4 = arith.constant 0 : index
    %c0_5 = arith.constant 0 : index
    %11 = vector.load %arg7[%c0_4, %c0_5] : memref<64x512xf32, #tpu.memory_space<vmem>>, vector<64x512xf32>
    tpu.vector_store %arg7[%c0_4, %c0_5], %10 {strides = array<i32>} : memref<64x512xf32, #tpu.memory_space<vmem>>, vector<64x512xf32>,
    %c0_6 = arith.constant 0 : index
    %c0_7 = arith.constant 0 : index
    %12 = vector.load %arg5[%c0_6, %c0_7] : memref<8x128xf32, #tpu.memory_space<vmem>>, vector<8x128xf32>
    %c0_8 = arith.constant 0 : index
    %c0_9 = arith.constant 0 : index
    %13 = vector.load %arg6[%c0_8, %c0_9] : memref<8x128xf32, #tpu.memory_space<vmem>>, vector<8x128xf32>
    %c0_10 = arith.constant 0 : index
    %c0_11 = arith.constant 0 : index
    %14 = vector.load %arg7[%c0_10, %c0_11] : memref<64x512xf32, #tpu.memory_space<vmem>>, vector<8x512xf32>
    %c0_12 = arith.constant 0 : index
    %c0_13 = arith.constant 0 : index
    %15 = vector.load %arg4[%c0_12, %c0_13] : memref<128x512xf32, #tpu.memory_space<vmem>>, vector<128x512xf32>
    %cst_14 = arith.constant dense<0.000000e+00> : vector<8x512xf32>
    %16 = tpu.matmul %12, %15, %cst_14 {dimension_numbers = #tpu.dot_dimension_numbers<[1], [0], [0], [1], [0, 0, 1, 1], [], []>} : vector<8x128xf32>, vector<128x512xf32>, vector<8x512xf32> -> vector<8x512xf32>
    %17 = arith.addf %14, %16 : vector<8x512xf32>
    %18 = vector.extract_strided_slice %17 {offsets = [0, 0], sizes = [8, 128], strides = [1, 1]} : vector<8x512xf32> to vector<8x128xf32>
    %19 = arith.negf %18 : vector<8x128xf32>
    %20 = math.exp %19 : vector<8x128xf32>
    %cst_15 = arith.constant 1.000000e+00 : f32
    %21 = vector.broadcast %cst_15 : f32 to vector<8x128xf32>
    %22 = arith.addf %21, %20 : vector<8x128xf32>
    %23 = arith.divf %21, %22 : vector<8x128xf32>
    %24 = vector.extract_strided_slice %17 {offsets = [0, 128], sizes = [8, 128], strides = [1, 1]} : vector<8x512xf32> to vector<8x128xf32>
    %25 = arith.negf %24 : vector<8x128xf32>
    %26 = math.exp %25 : vector<8x128xf32>
    %cst_16 = arith.constant 1.000000e+00 : f32
    %27 = vector.broadcast %cst_16 : f32 to vector<8x128xf32>
    %28 = arith.addf %27, %26 : vector<8x128xf32>
    %29 = arith.divf %27, %28 : vector<8x128xf32>
    %30 = vector.extract_strided_slice %17 {offsets = [0, 256], sizes = [8, 128], strides = [1, 1]} : vector<8x512xf32> to vector<8x128xf32>
    %31 = math.tanh %30 : vector<8x128xf32>
    %32 = vector.extract_strided_slice %17 {offsets = [0, 384], sizes = [8, 128], strides = [1, 1]} : vector<8x512xf32> to vector<8x128xf32>
    %33 = arith.negf %32 : vector<8x128xf32>
    %34 = math.exp %33 : vector<8x128xf32>
    %cst_17 = arith.constant 1.000000e+00 : f32
    %35 = vector.broadcast %cst_17 : f32 to vector<8x128xf32>
    %36 = arith.addf %35, %34 : vector<8x128xf32>
    %37 = arith.divf %35, %36 : vector<8x128xf32>
    %38 = arith.mulf %29, %13 : vector<8x128xf32>
    %39 = arith.mulf %23, %31 : vector<8x128xf32>
    %40 = arith.addf %38, %39 : vector<8x128xf32>
    %41 = math.tanh %40 : vector<8x128xf32>
    %42 = arith.mulf %37, %41 : vector<8x128xf32>
    %c8 = arith.constant 8 : index
    %c0_18 = arith.constant 0 : index
    %43 = vector.load %arg7[%c8, %c0_18] : memref<64x512xf32, #tpu.memory_space<vmem>>, vector<8x512xf32>
    %c0_19 = arith.constant 0 : index
    %c0_20 = arith.constant 0 : index
    %44 = vector.load %arg4[%c0_19, %c0_20] : memref<128x512xf32, #tpu.memory_space<vmem>>, vector<128x512xf32>
    %cst_21 = arith.constant dense<0.000000e+00> : vector<8x512xf32>
    %45 = tpu.matmul %42, %44, %cst_21 {dimension_numbers = #tpu.dot_dimension_numbers<[1], [0], [0], [1], [0, 0, 1, 1], [], []>} : vector<8x128xf32>, vector<128x512xf32>, vector<8x512xf32> -> vector<8x512xf32>
    %46 = arith.addf %43, %45 : vector<8x512xf32>
    %47 = vector.extract_strided_slice %46 {offsets = [0, 0], sizes = [8, 128], strides = [1, 1]} : vector<8x512xf32> to vector<8x128xf32>
    %48 = arith.negf %47 : vector<8x128xf32>
    %49 = math.exp %48 : vector<8x128xf32>
    %cst_22 = arith.constant 1.000000e+00 : f32
    %50 = vector.broadcast %cst_22 : f32 to vector<8x128xf32>
    %51 = arith.addf %50, %49 : vector<8x128xf32>
    %52 = arith.divf %50, %51 : vector<8x128xf32>
    %53 = vector.extract_strided_slice %46 {offsets = [0, 128], sizes = [8, 128], strides = [1, 1]} : vector<8x512xf32> to vector<8x128xf32>
    %54 = arith.negf %53 : vector<8x128xf32>
    %55 = math.exp %54 : vector<8x128xf32>
    %cst_23 = arith.constant 1.000000e+00 : f32
    %56 = vector.broadcast %cst_23 : f32 to vector<8x128xf32>
    %57 = arith.addf %56, %55 : vector<8x128xf32>
    %58 = arith.divf %56, %57 : vector<8x128xf32>
    %59 = vector.extract_strided_slice %46 {offsets = [0, 256], sizes = [8, 128], strides = [1, 1]} : vector<8x512xf32> to vector<8x128xf32>
    %60 = math.tanh %59 : vector<8x128xf32>
    %61 = vector.extract_strided_slice %46 {offsets = [0, 384], sizes = [8, 128], strides = [1, 1]} : vector<8x512xf32> to vector<8x128xf32>
    %62 = arith.negf %61 : vector<8x128xf32>
    %63 = math.exp %62 : vector<8x128xf32>
    %cst_24 = arith.constant 1.000000e+00 : f32
    %64 = vector.broadcast %cst_24 : f32 to vector<8x128xf32>
    %65 = arith.addf %64, %63 : vector<8x128xf32>
    %66 = arith.divf %64, %65 : vector<8x128xf32>
    %67 = arith.mulf %58, %40 : vector<8x128xf32>
    %68 = arith.mulf %52, %60 : vector<8x128xf32>
    %69 = arith.addf %67, %68 : vector<8x128xf32>
    %70 = math.tanh %69 : vector<8x128xf32>
    %71 = arith.mulf %66, %70 : vector<8x128xf32>
    %c16 = arith.constant 16 : index
    %c0_25 = arith.constant 0 : index
    %72 = vector.load %arg7[%c16, %c0_25] : memref<64x512xf32, #tpu.memory_space<vmem>>, vector<8x512xf32>
    %c0_26 = arith.constant 0 : index
    %c0_27 = arith.constant 0 : index
    %73 = vector.load %arg4[%c0_26, %c0_27] : memref<128x512xf32, #tpu.memory_space<vmem>>, vector<128x512xf32>
    %cst_28 = arith.constant dense<0.000000e+00> : vector<8x512xf32>
    %74 = tpu.matmul %71, %73, %cst_28 {dimension_numbers = #tpu.dot_dimension_numbers<[1], [0], [0], [1], [0, 0, 1, 1], [], []>} : vector<8x128xf32>, vector<128x512xf32>, vector<8x512xf32> -> vector<8x512xf32>
    %75 = arith.addf %72, %74 : vector<8x512xf32>
    %76 = vector.extract_strided_slice %75 {offsets = [0, 0], sizes = [8, 128], strides = [1, 1]} : vector<8x512xf32> to vector<8x128xf32>
    %77 = arith.negf %76 : vector<8x128xf32>
    %78 = math.exp %77 : vector<8x128xf32>
    %cst_29 = arith.constant 1.000000e+00 : f32
    %79 = vector.broadcast %cst_29 : f32 to vector<8x128xf32>
    %80 = arith.addf %79, %78 : vector<8x128xf32>
    %81 = arith.divf %79, %80 : vector<8x128xf32>
    %82 = vector.extract_strided_slice %75 {offsets = [0, 128], sizes = [8, 128], strides = [1, 1]} : vector<8x512xf32> to vector<8x128xf32>
    %83 = arith.negf %82 : vector<8x128xf32>
    %84 = math.exp %83 : vector<8x128xf32>
    %cst_30 = arith.constant 1.000000e+00 : f32
    %85 = vector.broadcast %cst_30 : f32 to vector<8x128xf32>
    %86 = arith.addf %85, %84 : vector<8x128xf32>
    %87 = arith.divf %85, %86 : vector<8x128xf32>
    %88 = vector.extract_strided_slice %75 {offsets = [0, 256], sizes = [8, 128], strides = [1, 1]} : vector<8x512xf32> to vector<8x128xf32>
    %89 = math.tanh %88 : vector<8x128xf32>
    %90 = vector.extract_strided_slice %75 {offsets = [0, 384], sizes = [8, 128], strides = [1, 1]} : vector<8x512xf32> to vector<8x128xf32>
    %91 = arith.negf %90 : vector<8x128xf32>
    %92 = math.exp %91 : vector<8x128xf32>
    %cst_31 = arith.constant 1.000000e+00 : f32
    %93 = vector.broadcast %cst_31 : f32 to vector<8x128xf32>
    %94 = arith.addf %93, %92 : vector<8x128xf32>
    %95 = arith.divf %93, %94 : vector<8x128xf32>
    %96 = arith.mulf %87, %69 : vector<8x128xf32>
    %97 = arith.mulf %81, %89 : vector<8x128xf32>
    %98 = arith.addf %96, %97 : vector<8x128xf32>
    %99 = math.tanh %98 : vector<8x128xf32>
    %100 = arith.mulf %95, %99 : vector<8x128xf32>
    %c24 = arith.constant 24 : index
    %c0_32 = arith.constant 0 : index
    %101 = vector.load %arg7[%c24, %c0_32] : memref<64x512xf32, #tpu.memory_space<vmem>>, vector<8x512xf32>
    %c0_33 = arith.constant 0 : index
    %c0_34 = arith.constant 0 : index
    %102 = vector.load %arg4[%c0_33, %c0_34] : memref<128x512xf32, #tpu.memory_space<vmem>>, vector<128x512xf32>
    %cst_35 = arith.constant dense<0.000000e+00> : vector<8x512xf32>
    %103 = tpu.matmul %100, %102, %cst_35 {dimension_numbers = #tpu.dot_dimension_numbers<[1], [0], [0], [1], [0, 0, 1, 1], [], []>} : vector<8x128xf32>, vector<128x512xf32>, vector<8x512xf32> -> vector<8x512xf32>
    %104 = arith.addf %101, %103 : vector<8x512xf32>
    %105 = vector.extract_strided_slice %104 {offsets = [0, 0], sizes = [8, 128], strides = [1, 1]} : vector<8x512xf32> to vector<8x128xf32>
    %106 = arith.negf %105 : vector<8x128xf32>
    %107 = math.exp %106 : vector<8x128xf32>
    %cst_36 = arith.constant 1.000000e+00 : f32
    %108 = vector.broadcast %cst_36 : f32 to vector<8x128xf32>
    %109 = arith.addf %108, %107 : vector<8x128xf32>
    %110 = arith.divf %108, %109 : vector<8x128xf32>
    %111 = vector.extract_strided_slice %104 {offsets = [0, 128], sizes = [8, 128], strides = [1, 1]} : vector<8x512xf32> to vector<8x128xf32>
    %112 = arith.negf %111 : vector<8x128xf32>
    %113 = math.exp %112 : vector<8x128xf32>
    %cst_37 = arith.constant 1.000000e+00 : f32
    %114 = vector.broadcast %cst_37 : f32 to vector<8x128xf32>
    %115 = arith.addf %114, %113 : vector<8x128xf32>
    %116 = arith.divf %114, %115 : vector<8x128xf32>
    %117 = vector.extract_strided_slice %104 {offsets = [0, 256], sizes = [8, 128], strides = [1, 1]} : vector<8x512xf32> to vector<8x128xf32>
    %118 = math.tanh %117 : vector<8x128xf32>
    %119 = vector.extract_strided_slice %104 {offsets = [0, 384], sizes = [8, 128], strides = [1, 1]} : vector<8x512xf32> to vector<8x128xf32>
    %120 = arith.negf %119 : vector<8x128xf32>
    %121 = math.exp %120 : vector<8x128xf32>
    %cst_38 = arith.constant 1.000000e+00 : f32
    %122 = vector.broadcast %cst_38 : f32 to vector<8x128xf32>
    %123 = arith.addf %122, %121 : vector<8x128xf32>
    %124 = arith.divf %122, %123 : vector<8x128xf32>
    %125 = arith.mulf %116, %98 : vector<8x128xf32>
    %126 = arith.mulf %110, %118 : vector<8x128xf32>
    %127 = arith.addf %125, %126 : vector<8x128xf32>
    %128 = math.tanh %127 : vector<8x128xf32>
    %129 = arith.mulf %124, %128 : vector<8x128xf32>
    %c32 = arith.constant 32 : index
    %c0_39 = arith.constant 0 : index
    %130 = vector.load %arg7[%c32, %c0_39] : memref<64x512xf32, #tpu.memory_space<vmem>>, vector<8x512xf32>
    %c0_40 = arith.constant 0 : index
    %c0_41 = arith.constant 0 : index
    %131 = vector.load %arg4[%c0_40, %c0_41] : memref<128x512xf32, #tpu.memory_space<vmem>>, vector<128x512xf32>
    %cst_42 = arith.constant dense<0.000000e+00> : vector<8x512xf32>
    %132 = tpu.matmul %129, %131, %cst_42 {dimension_numbers = #tpu.dot_dimension_numbers<[1], [0], [0], [1], [0, 0, 1, 1], [], []>} : vector<8x128xf32>, vector<128x512xf32>, vector<8x512xf32> -> vector<8x512xf32>
    %133 = arith.addf %130, %132 : vector<8x512xf32>
    %134 = vector.extract_strided_slice %133 {offsets = [0, 0], sizes = [8, 128], strides = [1, 1]} : vector<8x512xf32> to vector<8x128xf32>
    %135 = arith.negf %134 : vector<8x128xf32>
    %136 = math.exp %135 : vector<8x128xf32>
    %cst_43 = arith.constant 1.000000e+00 : f32
    %137 = vector.broadcast %cst_43 : f32 to vector<8x128xf32>
    %138 = arith.addf %137, %136 : vector<8x128xf32>
    %139 = arith.divf %137, %138 : vector<8x128xf32>
    %140 = vector.extract_strided_slice %133 {offsets = [0, 128], sizes = [8, 128], strides = [1, 1]} : vector<8x512xf32> to vector<8x128xf32>
    %141 = arith.negf %140 : vector<8x128xf32>
    %142 = math.exp %141 : vector<8x128xf32>
    %cst_44 = arith.constant 1.000000e+00 : f32
    %143 = vector.broadcast %cst_44 : f32 to vector<8x128xf32>
    %144 = arith.addf %143, %142 : vector<8x128xf32>
    %145 = arith.divf %143, %144 : vector<8x128xf32>
    %146 = vector.extract_strided_slice %133 {offsets = [0, 256], sizes = [8, 128], strides = [1, 1]} : vector<8x512xf32> to vector<8x128xf32>
    %147 = math.tanh %146 : vector<8x128xf32>
    %148 = vector.extract_strided_slice %133 {offsets = [0, 384], sizes = [8, 128], strides = [1, 1]} : vector<8x512xf32> to vector<8x128xf32>
    %149 = arith.negf %148 : vector<8x128xf32>
    %150 = math.exp %149 : vector<8x128xf32>
    %cst_45 = arith.constant 1.000000e+00 : f32
    %151 = vector.broadcast %cst_45 : f32 to vector<8x128xf32>
    %152 = arith.addf %151, %150 : vector<8x128xf32>
    %153 = arith.divf %151, %152 : vector<8x128xf32>
    %154 = arith.mulf %145, %127 : vector<8x128xf32>
    %155 = arith.mulf %139, %147 : vector<8x128xf32>
    %156 = arith.addf %154, %155 : vector<8x128xf32>
    %157 = math.tanh %156 : vector<8x128xf32>
    %158 = arith.mulf %153, %157 : vector<8x128xf32>
    %c40 = arith.constant 40 : index
    %c0_46 = arith.constant 0 : index
    %159 = vector.load %arg7[%c40, %c0_46] : memref<64x512xf32, #tpu.memory_space<vmem>>, vector<8x512xf32>
    %c0_47 = arith.constant 0 : index
    %c0_48 = arith.constant 0 : index
    %160 = vector.load %arg4[%c0_47, %c0_48] : memref<128x512xf32, #tpu.memory_space<vmem>>, vector<128x512xf32>
    %cst_49 = arith.constant dense<0.000000e+00> : vector<8x512xf32>
    %161 = tpu.matmul %158, %160, %cst_49 {dimension_numbers = #tpu.dot_dimension_numbers<[1], [0], [0], [1], [0, 0, 1, 1], [], []>} : vector<8x128xf32>, vector<128x512xf32>, vector<8x512xf32> -> vector<8x512xf32>
    %162 = arith.addf %159, %161 : vector<8x512xf32>
    %163 = vector.extract_strided_slice %162 {offsets = [0, 0], sizes = [8, 128], strides = [1, 1]} : vector<8x512xf32> to vector<8x128xf32>
    %164 = arith.negf %163 : vector<8x128xf32>
    %165 = math.exp %164 : vector<8x128xf32>
    %cst_50 = arith.constant 1.000000e+00 : f32
    %166 = vector.broadcast %cst_50 : f32 to vector<8x128xf32>
    %167 = arith.addf %166, %165 : vector<8x128xf32>
    %168 = arith.divf %166, %167 : vector<8x128xf32>
    %169 = vector.extract_strided_slice %162 {offsets = [0, 128], sizes = [8, 128], strides = [1, 1]} : vector<8x512xf32> to vector<8x128xf32>
    %170 = arith.negf %169 : vector<8x128xf32>
    %171 = math.exp %170 : vector<8x128xf32>
    %cst_51 = arith.constant 1.000000e+00 : f32
    %172 = vector.broadcast %cst_51 : f32 to vector<8x128xf32>
    %173 = arith.addf %172, %171 : vector<8x128xf32>
    %174 = arith.divf %172, %173 : vector<8x128xf32>
    %175 = vector.extract_strided_slice %162 {offsets = [0, 256], sizes = [8, 128], strides = [1, 1]} : vector<8x512xf32> to vector<8x128xf32>
    %176 = math.tanh %175 : vector<8x128xf32>
    %177 = vector.extract_strided_slice %162 {offsets = [0, 384], sizes = [8, 128], strides = [1, 1]} : vector<8x512xf32> to vector<8x128xf32>
    %178 = arith.negf %177 : vector<8x128xf32>
    %179 = math.exp %178 : vector<8x128xf32>
    %cst_52 = arith.constant 1.000000e+00 : f32
    %180 = vector.broadcast %cst_52 : f32 to vector<8x128xf32>
    %181 = arith.addf %180, %179 : vector<8x128xf32>
    %182 = arith.divf %180, %181 : vector<8x128xf32>
    %183 = arith.mulf %174, %156 : vector<8x128xf32>
    %184 = arith.mulf %168, %176 : vector<8x128xf32>
    %185 = arith.addf %183, %184 : vector<8x128xf32>
    %186 = math.tanh %185 : vector<8x128xf32>
    %187 = arith.mulf %182, %186 : vector<8x128xf32>
    %c48 = arith.constant 48 : index
    %c0_53 = arith.constant 0 : index
    %188 = vector.load %arg7[%c48, %c0_53] : memref<64x512xf32, #tpu.memory_space<vmem>>, vector<8x512xf32>
    %c0_54 = arith.constant 0 : index
    %c0_55 = arith.constant 0 : index
    %189 = vector.load %arg4[%c0_54, %c0_55] : memref<128x512xf32, #tpu.memory_space<vmem>>, vector<128x512xf32>
    %cst_56 = arith.constant dense<0.000000e+00> : vector<8x512xf32>
    %190 = tpu.matmul %187, %189, %cst_56 {dimension_numbers = #tpu.dot_dimension_numbers<[1], [0], [0], [1], [0, 0, 1, 1], [], []>} : vector<8x128xf32>, vector<128x512xf32>, vector<8x512xf32> -> vector<8x512xf32>
    %191 = arith.addf %188, %190 : vector<8x512xf32>
    %192 = vector.extract_strided_slice %191 {offsets = [0, 0], sizes = [8, 128], strides = [1, 1]} : vector<8x512xf32> to vector<8x128xf32>
    %193 = arith.negf %192 : vector<8x128xf32>
    %194 = math.exp %193 : vector<8x128xf32>
    %cst_57 = arith.constant 1.000000e+00 : f32
    %195 = vector.broadcast %cst_57 : f32 to vector<8x128xf32>
    %196 = arith.addf %195, %194 : vector<8x128xf32>
    %197 = arith.divf %195, %196 : vector<8x128xf32>
    %198 = vector.extract_strided_slice %191 {offsets = [0, 128], sizes = [8, 128], strides = [1, 1]} : vector<8x512xf32> to vector<8x128xf32>
    %199 = arith.negf %198 : vector<8x128xf32>
    %200 = math.exp %199 : vector<8x128xf32>
    %cst_58 = arith.constant 1.000000e+00 : f32
    %201 = vector.broadcast %cst_58 : f32 to vector<8x128xf32>
    %202 = arith.addf %201, %200 : vector<8x128xf32>
    %203 = arith.divf %201, %202 : vector<8x128xf32>
    %204 = vector.extract_strided_slice %191 {offsets = [0, 256], sizes = [8, 128], strides = [1, 1]} : vector<8x512xf32> to vector<8x128xf32>
    %205 = math.tanh %204 : vector<8x128xf32>
    %206 = vector.extract_strided_slice %191 {offsets = [0, 384], sizes = [8, 128], strides = [1, 1]} : vector<8x512xf32> to vector<8x128xf32>
    %207 = arith.negf %206 : vector<8x128xf32>
    %208 = math.exp %207 : vector<8x128xf32>
    %cst_59 = arith.constant 1.000000e+00 : f32
    %209 = vector.broadcast %cst_59 : f32 to vector<8x128xf32>
    %210 = arith.addf %209, %208 : vector<8x128xf32>
    %211 = arith.divf %209, %210 : vector<8x128xf32>
    %212 = arith.mulf %203, %185 : vector<8x128xf32>
    %213 = arith.mulf %197, %205 : vector<8x128xf32>
    %214 = arith.addf %212, %213 : vector<8x128xf32>
    %215 = math.tanh %214 : vector<8x128xf32>
    %216 = arith.mulf %211, %215 : vector<8x128xf32>
    %c56 = arith.constant 56 : index
    %c0_60 = arith.constant 0 : index
    %217 = vector.load %arg7[%c56, %c0_60] : memref<64x512xf32, #tpu.memory_space<vmem>>, vector<8x512xf32>
    %c0_61 = arith.constant 0 : index
    %c0_62 = arith.constant 0 : index
    %218 = vector.load %arg4[%c0_61, %c0_62] : memref<128x512xf32, #tpu.memory_space<vmem>>, vector<128x512xf32>
    %cst_63 = arith.constant dense<0.000000e+00> : vector<8x512xf32>
    %219 = tpu.matmul %216, %218, %cst_63 {dimension_numbers = #tpu.dot_dimension_numbers<[1], [0], [0], [1], [0, 0, 1, 1], [], []>} : vector<8x128xf32>, vector<128x512xf32>, vector<8x512xf32> -> vector<8x512xf32>
    %220 = arith.addf %217, %219 : vector<8x512xf32>
    %221 = vector.extract_strided_slice %220 {offsets = [0, 0], sizes = [8, 128], strides = [1, 1]} : vector<8x512xf32> to vector<8x128xf32>
    %222 = arith.negf %221 : vector<8x128xf32>
    %223 = math.exp %222 : vector<8x128xf32>
    %cst_64 = arith.constant 1.000000e+00 : f32
    %224 = vector.broadcast %cst_64 : f32 to vector<8x128xf32>
    %225 = arith.addf %224, %223 : vector<8x128xf32>
    %226 = arith.divf %224, %225 : vector<8x128xf32>
    %227 = vector.extract_strided_slice %220 {offsets = [0, 128], sizes = [8, 128], strides = [1, 1]} : vector<8x512xf32> to vector<8x128xf32>
    %228 = arith.negf %227 : vector<8x128xf32>
    %229 = math.exp %228 : vector<8x128xf32>
    %cst_65 = arith.constant 1.000000e+00 : f32
    %230 = vector.broadcast %cst_65 : f32 to vector<8x128xf32>
    %231 = arith.addf %230, %229 : vector<8x128xf32>
    %232 = arith.divf %230, %231 : vector<8x128xf32>
    %233 = vector.extract_strided_slice %220 {offsets = [0, 256], sizes = [8, 128], strides = [1, 1]} : vector<8x512xf32> to vector<8x128xf32>
    %234 = math.tanh %233 : vector<8x128xf32>
    %235 = vector.extract_strided_slice %220 {offsets = [0, 384], sizes = [8, 128], strides = [1, 1]} : vector<8x512xf32> to vector<8x128xf32>
    %236 = arith.negf %235 : vector<8x128xf32>
    %237 = math.exp %236 : vector<8x128xf32>
    %cst_66 = arith.constant 1.000000e+00 : f32
    %238 = vector.broadcast %cst_66 : f32 to vector<8x128xf32>
    %239 = arith.addf %238, %237 : vector<8x128xf32>
    %240 = arith.divf %238, %239 : vector<8x128xf32>
    %241 = arith.mulf %232, %214 : vector<8x128xf32>
    %242 = arith.mulf %226, %234 : vector<8x128xf32>
    %243 = arith.addf %241, %242 : vector<8x128xf32>
    %244 = math.tanh %243 : vector<8x128xf32>
    %245 = arith.mulf %240, %244 : vector<8x128xf32>
    %c0_67 = arith.constant 0 : index
    %c0_68 = arith.constant 0 : index
    %246 = vector.load %arg5[%c0_67, %c0_68] : memref<8x128xf32, #tpu.memory_space<vmem>>, vector<8x128xf32>
    tpu.vector_store %arg5[%c0_67, %c0_68], %245 {strides = array<i32>} : memref<8x128xf32, #tpu.memory_space<vmem>>, vector<8x128xf32>,
    %c0_69 = arith.constant 0 : index
    %c0_70 = arith.constant 0 : index
    %247 = vector.load %arg6[%c0_69, %c0_70] : memref<8x128xf32, #tpu.memory_space<vmem>>, vector<8x128xf32>
    tpu.vector_store %arg6[%c0_69, %c0_70], %243 {strides = array<i32>} : memref<8x128xf32, #tpu.memory_space<vmem>>, vector<8x128xf32>,
    return
  }
  func.func @transform_0(%arg0: i32, %arg1: i32) -> (i32, i32) {
    %c1_i32 = arith.constant 1 : i32
    %0 = arith.muli %arg0, %c1_i32 : i32
    %1 = arith.addi %0, %arg1 : i32
    %c0_i32 = arith.constant 0 : i32
    %c0_i32_0 = arith.constant 0 : i32
    return %1, %c0_i32 : i32, i32
  }
  func.func @transform_1(%arg0: i32, %arg1: i32) -> (i32, i32) {
    %c0_i32 = arith.constant 0 : i32
    %c0_i32_0 = arith.constant 0 : i32
    %c0_i32_1 = arith.constant 0 : i32
    return %c0_i32, %c0_i32_0 : i32, i32
  }
  func.func @transform_2(%arg0: i32, %arg1: i32) -> (i32, i32) {
    %c0_i32 = arith.constant 0 : i32
    %c0_i32_0 = arith.constant 0 : i32
    %c0_i32_1 = arith.constant 0 : i32
    return %c0_i32, %c0_i32_0 : i32, i32
  }
  func.func @transform_3(%arg0: i32, %arg1: i32) -> (i32, i32) {
    %c0_i32 = arith.constant 0 : i32
    %c0_i32_0 = arith.constant 0 : i32
    return %arg0, %c0_i32 : i32, i32
  }
}

</mosaic_0001>

<bundles_post_ra>
// kernel: tpu_custom_call.1
= control target key start
LH: loop header
LB: loop body
LE: loop exit
PB: predicated region body
PF: predicated region fallthrough
CT: control target
= control target key end

     0   :  { %8 = vsyncpa [#allocation5], 0  ;;  %s3224_s0 = inlined_call_operand.vmem [shape: s32[64,1], index: 0, kind: input, shape index: {}]   ;;  %s3225_s1 = inlined_call_operand.hbm [shape: f32[24,512], index: 1, kind: input, shape index: {}]   ;;  %s3226_s2 = inlined_call_operand.hbm [shape: f32[128,512], index: 2, kind: input, shape index: {}]   ;;  %s3227_s3 = inlined_call_operand.hbm [shape: f32[8,128], index: 3, kind: output, shape index: {}]  }
   0x1   :  { %9 = vsyncpa [#allocation8], 0 }
   0x2   :  { %10 = vsyncpa [#allocation6], 0  ;;  %s2715_s12 = smov [#allocation4]   ;;  %s2643_s16 = scalar_lea.hbm %s3225_s1, 1536 }
   0x3   :  { %s26_s13 = sshll.u32 %s2715_s12, 4  ;;  %p2644_p0 = scmp.ne.s32.totalorder %s3225_s1, %s2643_s16  ;;  %s27_s13 = int_to_ptr.vmem [resolvable:$true] %s26_s13 }
   0x4   :  { %p2647_p1 = scmp.lt.u32.totalorder %s2643_s16, %s3225_s1 }
   0x6   :  { %p2649_p2 = pnand %p2647_p1, %p2644_p0 }
   0x8   :  { %2652 = shalt.err (!%p2649_p2)
}
   0x9   :  { %s2653_s21 = scalar_lea.vmem %s27_s13, 1536  ;;  %p2658_p4 = scmp.lt.s32.totalorder %s27_s13, %s27_s13 }
   0xa   :  { %p2654_p3 = scmp.ne.s32.totalorder %s27_s13, %s2653_s21  ;;  %p2659_p5 = scmp.lt.s32.totalorder %s2653_s21, %s2653_s21 }
   0xc   :  { %p2660_p6 = por %p2659_p5, %p2658_p4 }
   0xe   :  { %p2661_p7 = pnand %p2660_p6, %p2654_p3 }
  0x10   :  { %2664 = shalt.err (!%p2661_p7)
}
  0x11   :  { %s2716_s22 = smov 512   ;;  %s2717_s23 = smov 32  }
  0x12   :  { %32 = dma.hbm_to_vmem [thread:$0]  %s3225_s1, 1536, %s27_s13, [#allocation5], %s2716_s22, %s2716_s22, %s2717_s23  }
  0x13   :  { %s2718_s26 = smov [#allocation7]   ;;  %s2665_s30 = scalar_lea.hbm %s3226_s2, 8192 }
  0x14   :  { %s38_s27 = sshll.u32 %s2718_s26, 4  ;;  %p2666_p8 = scmp.ne.s32.totalorder %s3226_s2, %s2665_s30  ;;  %s39_s27 = int_to_ptr.vmem [resolvable:$true] %s38_s27 }
  0x15   :  { %p2669_p9 = scmp.lt.u32.totalorder %s2665_s30, %s3226_s2 }
  0x17   :  { %p2671_p10 = pnand %p2669_p9, %p2666_p8 }
  0x19   :  { %2674 = shalt.err (!%p2671_p10)
}
  0x1a   :  { %s2675_s8 = scalar_lea.vmem %s39_s27, 8192  ;;  %p2680_p12 = scmp.lt.s32.totalorder %s39_s27, %s39_s27 }
  0x1b   :  { %p2676_p11 = scmp.ne.s32.totalorder %s39_s27, %s2675_s8  ;;  %p2681_p13 = scmp.lt.s32.totalorder %s2675_s8, %s2675_s8 }
  0x1d   :  { %p2682_p0 = por %p2681_p13, %p2680_p12 }
  0x1f   :  { %p2683_p1 = pnand %p2682_p0, %p2676_p11 }
  0x21   :  { %2686 = shalt.err (!%p2683_p1)
}
  0x22   :  { %44 = dma.hbm_to_vmem [thread:$0]  %s3226_s2, 8192, %s39_s27, [#allocation8], %s2716_s22, %s2716_s22, %s2717_s23  }
  0x23   :  { %2709 = dma.done.wait [#allocation5], 1536  }
  0x24   :  { %2710 = vsyncadd [#allocation5], 4294965760 }
  0x25   :  { %2711 = dma.done.wait [#allocation8], 8192  }
  0x26   :  { %2712 = vsyncadd [#allocation8], 4294959104  ;;  %v2719_v0 = vmov 0   ;;  %v2720_v1 = vmov 0.0   ;;  %v73_v2 = vld [vmem:[%s3224_s0 + $0x10] sm:$0xff]  ;;  %v71_v3 = vld [vmem:[%s3224_s0] sm:$0xff]  ;;  %v79_v32 = vlaneseq }
  0x27   :  { %2514 = vset.pattern.permute.xlu1 %v2719_v0  ;;  %2513 = vset.pattern.permute.xlu0 %v2719_v0  ;;  %v74_v4 = vld [vmem:[%s3224_s0 + $0x18] sm:$0xff]  ;;  %v72_v5 = vld [vmem:[%s3224_s0 + $0x8] sm:$0xff]  ;;  %v129_v8 = vld [vmem:[#allocation4] sm:$0xff]  ;;  %vm141_vm0 = vcmask 195584  }
  0x28   :  { %230 = vmatprep.mubr.f32.mxu0 %v2720_v1  ;;  %343 = vmatprep.mubr.f32.mxu1 %v2720_v1  ;;  %v130_v6 = vld [vmem:[#allocation4 + $0x8] sm:$0xff]  ;;  %v133_v9 = vld [vmem:[#allocation4 + $0x20] sm:$0xff]  ;;  %v132_v12 = vld [vmem:[#allocation4 + $0x18] sm:$0xff]  ;;  %v2798_v34 = vand.u32 127, %v79_v32 }
  0x29   :  { %88 = vperm.xlu1 %2514, %v73_v2   ;;  %82 = vperm.xlu0 %2513, %v71_v3   ;;  %v134_v7 = vld [vmem:[#allocation4 + $0x28] sm:$0xff]  ;;  %v1956_v11 = vpack.c.bf16 %v133_v9, %v129_v8  ;;  %v136_v13 = vld [vmem:[#allocation4 + $0x38] sm:$0xff]  ;;  %v131_v14 = vld [vmem:[#allocation4 + $0x10] sm:$0xff] }
  0x2a   :  { %v1954_v10 = vpack.c.bf16 %v134_v7, %v130_v6  ;;  %v1958_v15 = vpack.c.bf16 %v136_v13, %v132_v12  ;;  %v135_v16 = vld [vmem:[#allocation4 + $0x30] sm:$0xff]  ;;  %v138_v17 = vld [vmem:[#allocation4 + $0x48] sm:$0xff]  ;;  %v75_v19 = vld [vmem:[%s3224_s0 + $0x20] sm:$0xff] }
  0x2b   :  { %v76_v18 = vld [vmem:[%s3224_s0 + $0x28] sm:$0xff]  ;;  %v1960_v20 = vpack.c.bf16 %v135_v16, %v131_v14  ;;  %v140_v22 = vld [vmem:[#allocation4 + $0x58] sm:$0xff]  ;;  %v137_v24 = vld [vmem:[#allocation4 + $0x40] sm:$0xff] }
  0x2c   :  { %1955 = vmatprep.subr.bf16.mxu0 %v1954_v10  ;;  %v431_v21 = vld [vmem:[#allocation7 + $0x8] sm:$0xff]  ;;  %1959 = vmatprep.subr.bf16.mxu1 %v1958_v15  ;;  %v433_v26 = vld [vmem:[#allocation7 + $0x18] sm:$0xff]  ;;  %v139_v28 = vld [vmem:[#allocation4 + $0x50] sm:$0xff] }
  0x2d   :  { %91 = vperm.xlu1 %2514, %v74_v4   ;;  %85 = vperm.xlu0 %2513, %v72_v5   ;;  %v435_v23 = vld [vmem:[#allocation7 + $0x28] sm:$0xff]  ;;  %v437_v27 = vld [vmem:[#allocation7 + $0x38] sm:$0xff]  ;;  %v77_v30 = vld [vmem:[%s3224_s0 + $0x30] sm:$0xff] }
  0x2e   :  { %1957 = vmatpush1.bf16.msra.mxu0 %v1956_v11  ;;  %1961 = vmatpush1.bf16.msra.mxu1 %v1960_v20  ;;  %v2786_v25 = vpack.c.bf16 %v435_v23, %v431_v21  ;;  %v78_v29 = vld [vmem:[%s3224_s0 + $0x38] sm:$0xff]  ;;  %v2794_v31 = vpack.c.bf16 %v437_v27, %v433_v26  ;;  %v430_v33 = vld [vmem:[#allocation7] sm:$0xff]  ;;  %v432_v36 = vld [vmem:[#allocation7 + $0x10] sm:$0xff]  ;;  %s2721_s0 = smov [#allocation9]  }
  0x2f   :  { %170 = vmatprep.subr.mxu0 %v138_v17  ;;  %283 = vmatprep.subr.mxu1 %v140_v22  ;;  %v434_v35 = vld [vmem:[#allocation7 + $0x20] sm:$0xff]  ;;  %v436_v37 = vld [vmem:[#allocation7 + $0x30] sm:$0xff]  ;;  %v439_v38 = vld [vmem:[#allocation7 + $0x48] sm:$0xff]  ;;  %s1890_s25 = sshll.u32 %s2721_s0, 4  ;;  %s1891_s25 = int_to_ptr.vmem [resolvable:$true] %s1890_s25 }
  0x30   :  { %v443_v39 = vld [vmem:[#allocation7 + $0x68] sm:$0xff]  ;;  %v441_v40 = vld [vmem:[#allocation7 + $0x58] sm:$0xff]  ;;  %v2800_v43 = vpack.c.bf16 %v434_v35, %v430_v33  ;;  %v2802_v44 = vpack.c.bf16 %v436_v37, %v432_v36  ;;  %v438_v45 = vld [vmem:[#allocation7 + $0x40] sm:$0xff]  ;;  %s2687_s26 = scalar_lea.vmem %s1891_s25, 128  ;;  %p2692_p3 = scmp.lt.s32.totalorder %s1891_s25, %s1891_s25 }
  0x31   :  { %97 = vperm.xlu1 %2514, %v76_v18   ;;  %94 = vperm.xlu0 %2513, %v75_v19   ;;  %v445_v41 = vld [vmem:[#allocation7 + $0x78] sm:$0xff]  ;;  %v442_v46 = vld [vmem:[#allocation7 + $0x60] sm:$0xff]  ;;  %v440_v47 = vld [vmem:[#allocation7 + $0x50] sm:$0xff]  ;;  %v2806_v50 = vpack.c.bf16 %v443_v39, %v439_v38  ;;  %p2688_p2 = scmp.ne.s32.totalorder %s1891_s25, %s2687_s26  ;;  %p2693_p4 = scmp.lt.s32.totalorder %s2687_s26, %s2687_s26 }
  0x32   :  { %171 = vmatpush1.msra.mxu0 %v137_v24  ;;  %284 = vmatpush1.msra.mxu1 %v139_v28  ;;  %v444_v48 = vld [vmem:[#allocation7 + $0x70] sm:$0xff]  ;;  %v2808_v51 = vpack.c.bf16 %v445_v41, %v441_v40  ;;  %v447_v52 = vld [vmem:[#allocation7 + $0x88] sm:$0xff]  ;;  %v449_v54 = vld [vmem:[#allocation7 + $0x98] sm:$0xff]  ;;  %v2814_v58 = vpack.c.bf16 %v442_v46, %v438_v45 }
  0x33   :  { %1963 = vmatprep.subr.bf16.mxu0 %v2786_v25  ;;  %1995 = vmatprep.subr.bf16.mxu1 %v2794_v31  ;;  %v451_v53 = vld [vmem:[#allocation7 + $0xa8] sm:$0xff]  ;;  %v453_v55 = vld [vmem:[#allocation7 + $0xb8] sm:$0xff]  ;;  %v2816_v59 = vpack.c.bf16 %v444_v48, %v440_v47  ;;  %v446_v60 = vld [vmem:[#allocation7 + $0x80] sm:$0xff]  ;;  %p2694_p5 = por %p2693_p4, %p2692_p3 }
  0x34   :  { %v450_v61 = vld [vmem:[#allocation7 + $0xa0] sm:$0xff]  ;;  %v448_v62 = vld [vmem:[#allocation7 + $0x90] sm:$0xff]  ;;  %v2825_v2 = vpack.c.bf16 %v451_v53, %v447_v52  ;;  %v2827_v3 = vpack.c.bf16 %v453_v55, %v449_v54  ;;  %v455_v4 = vld [vmem:[#allocation7 + $0xc8] sm:$0xff] }
  0x35   :  { %103 = vperm.xlu1 %2514, %v78_v29   ;;  %100 = vperm.xlu0 %2513, %v77_v30   ;;  %v452_v63 = vld [vmem:[#allocation7 + $0xb0] sm:$0xff]  ;;  %v459_v5 = vld [vmem:[#allocation7 + $0xe8] sm:$0xff]  ;;  %v457_v6 = vld [vmem:[#allocation7 + $0xd8] sm:$0xff]  ;;  %v2836_v9 = vpack.c.bf16 %v450_v61, %v446_v60  ;;  %p2695_p6 = pnand %p2694_p5, %p2688_p2 }
  0x36   :  { %v461_v7 = vld [vmem:[#allocation7 + $0xf8] sm:$0xff]  ;;  %v2838_v10 = vpack.c.bf16 %v452_v63, %v448_v62  ;;  %v454_v11 = vld [vmem:[#allocation7 + $0xc0] sm:$0xff]  ;;  %v456_v13 = vld [vmem:[#allocation7 + $0xd0] sm:$0xff]  ;;  %v2844_v16 = vpack.c.bf16 %v459_v5, %v455_v4 }
  0x37   :  { %v458_v12 = vld [vmem:[#allocation7 + $0xe0] sm:$0xff]  ;;  %v460_v14 = vld [vmem:[#allocation7 + $0xf0] sm:$0xff]  ;;  %v2846_v17 = vpack.c.bf16 %v461_v7, %v457_v6  ;;  %v463_v18 = vld [vmem:[#allocation7 + $0x108] sm:$0xff] }
  0x38   :  { %v467_v19 = vld [vmem:[#allocation7 + $0x128] sm:$0xff]  ;;  %v465_v20 = vld [vmem:[#allocation7 + $0x118] sm:$0xff]  ;;  %v2853_v23 = vpack.c.bf16 %v458_v12, %v454_v11  ;;  %v2855_v24 = vpack.c.bf16 %v460_v14, %v456_v13  ;;  %v462_v26 = vld [vmem:[#allocation7 + $0x100] sm:$0xff] }
  0x39   :  { %v469_v21 = vld [vmem:[#allocation7 + $0x138] sm:$0xff]  ;;  %v466_v27 = vld [vmem:[#allocation7 + $0x120] sm:$0xff]  ;;  %v464_v28 = vld [vmem:[#allocation7 + $0x110] sm:$0xff]  ;;  %v2864_v32 = vpack.c.bf16 %v467_v19, %v463_v18 }
  0x3a   :  { %v468_v29 = vld [vmem:[#allocation7 + $0x130] sm:$0xff]  ;;  %v2866_v33 = vpack.c.bf16 %v469_v21, %v465_v20  ;;  %v471_v35 = vld [vmem:[#allocation7 + $0x148] sm:$0xff]  ;;  %v473_v37 = vld [vmem:[#allocation7 + $0x158] sm:$0xff]  ;;  %v2873_v40 = vpack.c.bf16 %v466_v27, %v462_v26 }
  0x3b   :  { %v475_v36 = vld [vmem:[#allocation7 + $0x168] sm:$0xff]  ;;  %v477_v38 = vld [vmem:[#allocation7 + $0x178] sm:$0xff]  ;;  %v2875_v41 = vpack.c.bf16 %v468_v29, %v464_v28  ;;  %v474_v45 = vld [vmem:[#allocation7 + $0x160] sm:$0xff] }
  0x3c   :  { %v472_v46 = vld [vmem:[#allocation7 + $0x150] sm:$0xff]  ;;  %v2886_v52 = vpack.c.bf16 %v477_v38, %v473_v37  ;;  %v479_v53 = vld [vmem:[#allocation7 + $0x188] sm:$0xff]  ;;  %v481_v55 = vld [vmem:[#allocation7 + $0x198] sm:$0xff] }
  0x3d   :  { %v476_v47 = vld [vmem:[#allocation7 + $0x170] sm:$0xff]  ;;  %v483_v54 = vld [vmem:[#allocation7 + $0x1a8] sm:$0xff]  ;;  %v478_v62 = vld [vmem:[#allocation7 + $0x180] sm:$0xff] }
  0x3e   :  { %v2895_v61 = vpack.c.bf16 %v476_v47, %v472_v46  ;;  %v482_v63 = vld [vmem:[#allocation7 + $0x1a0] sm:$0xff]  ;;  %v484_v4 = vld [vmem:[#allocation7 + $0x1b0] sm:$0xff]  ;;  %v2904_v6 = vpack.c.bf16 %v483_v54, %v479_v53  ;;  %v491_v11 = vld [vmem:[#allocation7 + $0x1e8] sm:$0xff] }
  0x3f   :  { %v489_v12 = vld [vmem:[#allocation7 + $0x1d8] sm:$0xff]  ;;  %v486_v19 = vld [vmem:[#allocation7 + $0x1c0] sm:$0xff]  ;;  %v488_v21 = vld [vmem:[#allocation7 + $0x1d0] sm:$0xff] }
  0x40   :  { %v493_v13 = vld [vmem:[#allocation7 + $0x1f8] sm:$0xff]  ;;  %v490_v20 = vld [vmem:[#allocation7 + $0x1e0] sm:$0xff] }
  0x41   :  { %v2926_v28 = vpack.c.bf16 %v493_v13, %v489_v12  ;;  %v2933_v29 = vpack.c.bf16 %v490_v20, %v486_v19 }
  0xa8   :  { %v83_v42 = vpop.permute.xlu0 %82  ;;  %v89_v56 = vpop.permute.xlu1 %88 }
  0xa9   :  { %vm105_vm1 = vcmp.eq.s32.totalorder %v83_v42, %v2798_v34  ;;  %vm107_vm2 = vcmp.eq.s32.totalorder %v89_v56, %v2798_v34  ;;  %v470_v42 = vld [vmem:[#allocation7 + $0x140] sm:$0xff]  ;;  %v485_v56 = vld [vmem:[#allocation7 + $0x1b8] sm:$0xff] }
  0xaa   :  { %v1906_v49 = vsel %vm105_vm1, 1.0, %v2720_v1  ;;  %v1908_v8 = vsel %vm107_vm2, 1.0, %v2720_v1  ;;  %v2893_v60 = vpack.c.bf16 %v474_v45, %v470_v42  ;;  %v2906_v7 = vpack.c.bf16 %v485_v56, %v481_v55 }
  0xab   :  { %1914 = vmatmul.mubr.msk.f32.vlgmr.msra.gmra.mrb[0].mxu0 %vm141_vm0, %v1906_v49  ;;  %1922 = vmatmul.mubr.msk.f32.vlgmr.msra.gmra.mrb[0].mxu1 %vm141_vm0, %v1906_v49  ;;  %v2884_v49 = vpack.c.bf16 %v475_v36, %v471_v35 }
  0xac   :  { %1965 = vmatpush1.bf16.msra.mxu0 %v2800_v43  ;;  %1997 = vmatpush1.bf16.msra.mxu1 %v2802_v44  ;;  %v86_v57 = vpop.permute.xlu0 %85  ;;  %v92_v15 = vpop.permute.xlu1 %91 }
  0xad   :  { %vm106_vm3 = vcmp.eq.s32.totalorder %v86_v57, %v2798_v34  ;;  %236 = vmatprep.mubr.f32.mxu0 %v2720_v1  ;;  %349 = vmatprep.mubr.f32.mxu1 %v2720_v1  ;;  %vm108_vm4 = vcmp.eq.s32.totalorder %v92_v15, %v2798_v34  ;;  %v2913_v15 = vpack.c.bf16 %v482_v63, %v478_v62 }
  0xae   :  { %v1907_v0 = vsel %vm106_vm3, 1.0, %v2720_v1  ;;  %1967 = vmatprep.subr.bf16.mxu0 %v2806_v50  ;;  %1999 = vmatprep.subr.bf16.mxu1 %v2808_v51  ;;  %v1909_v30 = vsel %vm108_vm4, 1.0, %v2720_v1 }
  0xaf   :  { %1915 = vmatmul.mubr.msk.f32.gmra.mrb[2].mxu0 %vm141_vm0, %v1907_v0  ;;  %1923 = vmatmul.mubr.msk.f32.gmra.mrb[2].mxu1 %vm141_vm0, %v1907_v0  ;;  %v480_v0 = vld [vmem:[#allocation7 + $0x190] sm:$0xff] }
  0xb0   :  { %1969 = vmatpush1.bf16.msra.mxu0 %v2814_v58  ;;  %2001 = vmatpush1.bf16.msra.mxu1 %v2816_v59  ;;  %v95_v22 = vpop.permute.xlu0 %94  ;;  %v98_v39 = vpop.permute.xlu1 %97  ;;  %v2915_v18 = vpack.c.bf16 %v484_v4, %v480_v0 }
  0xb1   :  { %242 = vmatprep.mubr.f32.mxu0 %v2720_v1  ;;  %355 = vmatprep.mubr.f32.mxu1 %v2720_v1  ;;  %vm109_vm5 = vcmp.eq.s32.totalorder %v95_v22, %v2798_v34  ;;  %vm110_vm6 = vcmp.eq.s32.totalorder %v98_v39, %v2798_v34  ;;  %v492_v22 = vld [vmem:[#allocation7 + $0x1f0] sm:$0xff] }
  0xb2   :  { %1971 = vmatprep.subr.bf16.mxu0 %v2825_v2  ;;  %2003 = vmatprep.subr.bf16.mxu1 %v2827_v3  ;;  %v1910_v48 = vsel %vm109_vm5, 1.0, %v2720_v1  ;;  %v1911_v5 = vsel %vm110_vm6, 1.0, %v2720_v1 }
  0xb3   :  { %1916 = vmatmul.mubr.msk.f32.gmra.mrb[4].mxu0 %vm141_vm0, %v1908_v8  ;;  %1924 = vmatmul.mubr.msk.f32.gmra.mrb[4].mxu1 %vm141_vm0, %v1908_v8  ;;  %v487_v8 = vld [vmem:[#allocation7 + $0x1c8] sm:$0xff] }
  0xb4   :  { %1973 = vmatpush1.bf16.msra.mxu0 %v2836_v9  ;;  %2005 = vmatpush1.bf16.msra.mxu1 %v2838_v10  ;;  %v101_v57 = vpop.permute.xlu0 %100  ;;  %v104_v14 = vpop.permute.xlu1 %103  ;;  %v2924_v27 = vpack.c.bf16 %v491_v11, %v487_v8 }
  0xb5   :  { %248 = vmatprep.mubr.f32.mxu0 %v2720_v1  ;;  %361 = vmatprep.mubr.f32.mxu1 %v2720_v1  ;;  %vm111_vm7 = vcmp.eq.s32.totalorder %v101_v57, %v2798_v34  ;;  %vm112_vm8 = vcmp.eq.s32.totalorder %v104_v14, %v2798_v34 }
  0xb6   :  { %1975 = vmatprep.subr.bf16.mxu0 %v2844_v16  ;;  %2007 = vmatprep.subr.bf16.mxu1 %v2846_v17  ;;  %v1912_v26 = vsel %vm111_vm7, 1.0, %v2720_v1  ;;  %v1913_v35 = vsel %vm112_vm8, 1.0, %v2720_v1 }
  0xb7   :  { %1917 = vmatmul.mubr.msk.f32.gmra.mrb[6].mxu0 %vm141_vm0, %v1909_v30  ;;  %1925 = vmatmul.mubr.msk.f32.gmra.mrb[6].mxu1 %vm141_vm0, %v1909_v30  ;;  %v2935_v30 = vpack.c.bf16 %v492_v22, %v488_v21 }
  0xb8   :  { %1977 = vmatpush1.bf16.msra.mxu0 %v2853_v23  ;;  %2009 = vmatpush1.bf16.msra.mxu1 %v2855_v24 }
  0xb9   :  { %254 = vmatprep.mubr.f32.mxu0 %v2720_v1  ;;  %367 = vmatprep.mubr.f32.mxu1 %v2720_v1 }
  0xba   :  { %1979 = vmatprep.subr.bf16.mxu0 %v2864_v32  ;;  %2011 = vmatprep.subr.bf16.mxu1 %v2866_v33 }
  0xbb   :  { %1918 = vmatmul.mubr.msk.f32.gmra.mrb[8].mxu0 %vm141_vm0, %v1910_v48  ;;  %1926 = vmatmul.mubr.msk.f32.gmra.mrb[8].mxu1 %vm141_vm0, %v1910_v48 }
  0xbc   :  { %1981 = vmatpush1.bf16.msra.mxu0 %v2873_v40  ;;  %2013 = vmatpush1.bf16.msra.mxu1 %v2875_v41 }
  0xbd   :  { %260 = vmatprep.mubr.f32.mxu0 %v2720_v1  ;;  %373 = vmatprep.mubr.f32.mxu1 %v2720_v1 }
  0xbe   :  { %1983 = vmatprep.subr.bf16.mxu0 %v2884_v49  ;;  %2015 = vmatprep.subr.bf16.mxu1 %v2886_v52 }
  0xbf   :  { %1919 = vmatmul.mubr.msk.f32.gmra.mrb[10].mxu0 %vm141_vm0, %v1911_v5  ;;  %1927 = vmatmul.mubr.msk.f32.gmra.mrb[10].mxu1 %vm141_vm0, %v1911_v5 }
  0xc0   :  { %1985 = vmatpush1.bf16.msra.mxu0 %v2893_v60  ;;  %2017 = vmatpush1.bf16.msra.mxu1 %v2895_v61 }
  0xc1   :  { %266 = vmatprep.mubr.f32.mxu0 %v2720_v1  ;;  %379 = vmatprep.mubr.f32.mxu1 %v2720_v1 }
  0xc2   :  { %1987 = vmatprep.subr.bf16.mxu0 %v2904_v6  ;;  %2019 = vmatprep.subr.bf16.mxu1 %v2906_v7 }
  0xc3   :  { %1920 = vmatmul.mubr.msk.f32.gmra.mrb[12].mxu0 %vm141_vm0, %v1912_v26  ;;  %1928 = vmatmul.mubr.msk.f32.gmra.mrb[12].mxu1 %vm141_vm0, %v1912_v26 }
  0xc4   :  { %1989 = vmatpush1.bf16.msra.mxu0 %v2913_v15  ;;  %2021 = vmatpush1.bf16.msra.mxu1 %v2915_v18 }
  0xc5   :  { %272 = vmatprep.mubr.f32.mxu0 %v2720_v1  ;;  %385 = vmatprep.mubr.f32.mxu1 %v2720_v1 }
  0xc6   :  { %1991 = vmatprep.subr.bf16.mxu0 %v2924_v27  ;;  %2023 = vmatprep.subr.bf16.mxu1 %v2926_v28 }
  0xc7   :  { %1921 = vmatmul.mubr.msk.f32.gmra.mrb[14].mxu0 %vm141_vm0, %v1913_v35  ;;  %1929 = vmatmul.mubr.msk.f32.gmra.mrb[14].mxu1 %vm141_vm0, %v1913_v35 }
  0xc8   :  { %1993 = vmatpush1.bf16.msra.mxu0 %v2933_v29  ;;  %2025 = vmatpush1.bf16.msra.mxu1 %v2935_v30 }
  0xc9   :  { %558 = vmatprep.mubr.f32.mxu0 %v2720_v1  ;;  %629 = vmatprep.mubr.f32.mxu1 %v2720_v1 }
  0xca   :  { %2027 = vmatprep.subr.bf16.mxu0 %v2786_v25  ;;  %2059 = vmatprep.subr.bf16.mxu1 %v2794_v31 }
  0xcb   :  { %559 = vmatmul.mubr.f32.vlgmr.msra.gmra.mrb[0].mxu0 %v2720_v1  ;;  %630 = vmatmul.mubr.f32.vlgmr.msra.gmra.mrb[0].mxu1 %v2720_v1 }
  0xcc   :  { %2029 = vmatpush1.bf16.msra.mxu0 %v2800_v43  ;;  %2061 = vmatpush1.bf16.msra.mxu1 %v2802_v44 }
  0xcd   :  { %2031 = vmatprep.subr.bf16.mxu0 %v2806_v50  ;;  %2063 = vmatprep.subr.bf16.mxu1 %v2808_v51 }
  0xce   :  { %732 = vmatprep.mubr.f32.mxu0 %v2720_v1  ;;  %803 = vmatprep.mubr.f32.mxu1 %v2720_v1 }
  0xd0   :  { %2033 = vmatpush1.bf16.msra.mxu0 %v2814_v58  ;;  %2065 = vmatpush1.bf16.msra.mxu1 %v2816_v59 }
  0xd1   :  { %2035 = vmatprep.subr.bf16.mxu0 %v2825_v2  ;;  %2067 = vmatprep.subr.bf16.mxu1 %v2827_v3 }
  0xd4   :  { %2037 = vmatpush1.bf16.msra.mxu0 %v2836_v9  ;;  %2069 = vmatpush1.bf16.msra.mxu1 %v2838_v10 }
  0xd5   :  { %2039 = vmatprep.subr.bf16.mxu0 %v2844_v16  ;;  %2071 = vmatprep.subr.bf16.mxu1 %v2846_v17 }
  0xd8   :  { %2041 = vmatpush1.bf16.msra.mxu0 %v2853_v23  ;;  %2073 = vmatpush1.bf16.msra.mxu1 %v2855_v24 }
  0xd9   :  { %2043 = vmatprep.subr.bf16.mxu0 %v2864_v32  ;;  %2075 = vmatprep.subr.bf16.mxu1 %v2866_v33 }
  0xdc   :  { %2045 = vmatpush1.bf16.msra.mxu0 %v2873_v40  ;;  %2077 = vmatpush1.bf16.msra.mxu1 %v2875_v41 }
  0xdd   :  { %2047 = vmatprep.subr.bf16.mxu0 %v2884_v49  ;;  %2079 = vmatprep.subr.bf16.mxu1 %v2886_v52 }
  0xe0   :  { %2049 = vmatpush1.bf16.msra.mxu0 %v2893_v60  ;;  %2081 = vmatpush1.bf16.msra.mxu1 %v2895_v61 }
  0xe1   :  { %2051 = vmatprep.subr.bf16.mxu0 %v2904_v6  ;;  %2083 = vmatprep.subr.bf16.mxu1 %v2906_v7 }
  0xe4   :  { %2053 = vmatpush1.bf16.msra.mxu0 %v2913_v15  ;;  %2085 = vmatpush1.bf16.msra.mxu1 %v2915_v18 }
  0xe5   :  { %2055 = vmatprep.subr.bf16.mxu0 %v2924_v27  ;;  %2087 = vmatprep.subr.bf16.mxu1 %v2926_v28 }
  0xe8   :  { %2057 = vmatpush1.bf16.msra.mxu0 %v2933_v29  ;;  %2089 = vmatpush1.bf16.msra.mxu1 %v2935_v30 }
  0xe9   :  { %2091 = vmatprep.subr.bf16.mxu0 %v2786_v25  ;;  %2123 = vmatprep.subr.bf16.mxu1 %v2794_v31 }
 0x19e   :  { %v560_v34 = vpop.f32.mrb[0].mxu0  ;;  %v631_v36 = vpop.f32.mrb[0].mxu1 }
 0x19f   :  { %v1930_v37 = vmul.f32 -1.442695, %v560_v34  ;;  %v562_v38 = vpop.f32.mrb[1].mxu0  ;;  %v633_v39 = vpop.f32.mrb[1].mxu1 }
 0x1a0   :  { %v1931_v42 = vmul.f32 -1.442695, %v562_v38  ;;  %v1932_v45 = vmul.f32 -1.442695, %v633_v39 }
 0x1a1   :  { %2515 = vpow2.f32 %v1930_v37 }
 0x1a2   :  { %2517 = vpow2.f32 %v1931_v42 }
 0x1a3   :  { %2519 = vpow2.f32 %v1932_v45 }
 0x1a4   :  { %2521 = vtanh.f32 %v631_v36 }
 0x1ab   :  { %v2516_v46 = vpop.eup %2515 }
 0x1ac   :  { %v2518_v47 = vpop.eup %2517  ;;  %v643_v48 = vadd.f32 1.0, %v2516_v46 }
 0x1ad   :  { %v649_v53 = vadd.f32 1.0, %v2518_v47  ;;  %v2520_v54 = vpop.eup %2519 }
 0x1ae   :  { %2523 = vrcp.f32 %v643_v48  ;;  %v2522_v55 = vpop.eup %2521  ;;  %v656_v63 = vadd.f32 1.0, %v2520_v54 }
 0x1af   :  { %2525 = vrcp.f32 %v649_v53 }
 0x1b0   :  { %2527 = vrcp.f32 %v656_v63 }
 0x1b8   :  { %v2524_v56 = vpop.eup %2523 }
 0x1b9   :  { %v2526_v57 = vpop.eup %2525  ;;  %v660_v62 = vmul.f32 %v2524_v56, %v2522_v55 }
 0x1ba   :  { %v659_v0 = vmul.f32 0.0, %v2526_v57  ;;  %v2528_v5 = vpop.eup %2527 }
 0x1bc   :  { %v2986_v4 = vadd.f32 %v660_v62, %v659_v0 }
 0x1be   :  { %2529 = vtanh.f32 %v2986_v4 }
 0x1c8   :  { %v2530_v8 = vpop.eup %2529 }
 0x1c9   :  { %v663_v11 = vmul.f32 %v2530_v8, %v2528_v5 }
 0x1cb   :  { %733 = vmatmul.mubr.f32.vlgmr.msra.gmra.mrb[2].mxu0 %v663_v11  ;;  %804 = vmatmul.mubr.f32.vlgmr.msra.gmra.mrb[2].mxu1 %v663_v11 }
 0x1cc   :  { %2093 = vmatpush1.bf16.msra.mxu0 %v2800_v43  ;;  %2125 = vmatpush1.bf16.msra.mxu1 %v2802_v44 }
 0x1cd   :  { %2095 = vmatprep.subr.bf16.mxu0 %v2806_v50  ;;  %2127 = vmatprep.subr.bf16.mxu1 %v2808_v51 }
 0x1ce   :  { %906 = vmatprep.mubr.f32.mxu0 %v2720_v1  ;;  %977 = vmatprep.mubr.f32.mxu1 %v2720_v1 }
 0x1d0   :  { %2097 = vmatpush1.bf16.msra.mxu0 %v2814_v58  ;;  %2129 = vmatpush1.bf16.msra.mxu1 %v2816_v59 }
 0x1d1   :  { %2099 = vmatprep.subr.bf16.mxu0 %v2825_v2  ;;  %2131 = vmatprep.subr.bf16.mxu1 %v2827_v3 }
 0x1d4   :  { %2101 = vmatpush1.bf16.msra.mxu0 %v2836_v9  ;;  %2133 = vmatpush1.bf16.msra.mxu1 %v2838_v10 }
 0x1d5   :  { %2103 = vmatprep.subr.bf16.mxu0 %v2844_v16  ;;  %2135 = vmatprep.subr.bf16.mxu1 %v2846_v17 }
 0x1d8   :  { %2105 = vmatpush1.bf16.msra.mxu0 %v2853_v23  ;;  %2137 = vmatpush1.bf16.msra.mxu1 %v2855_v24 }
 0x1d9   :  { %2107 = vmatprep.subr.bf16.mxu0 %v2864_v32  ;;  %2139 = vmatprep.subr.bf16.mxu1 %v2866_v33 }
 0x1dc   :  { %2109 = vmatpush1.bf16.msra.mxu0 %v2873_v40  ;;  %2141 = vmatpush1.bf16.msra.mxu1 %v2875_v41 }
 0x1dd   :  { %2111 = vmatprep.subr.bf16.mxu0 %v2884_v49  ;;  %2143 = vmatprep.subr.bf16.mxu1 %v2886_v52 }
 0x1e0   :  { %2113 = vmatpush1.bf16.msra.mxu0 %v2893_v60  ;;  %2145 = vmatpush1.bf16.msra.mxu1 %v2895_v61 }
 0x1e1   :  { %2115 = vmatprep.subr.bf16.mxu0 %v2904_v6  ;;  %2147 = vmatprep.subr.bf16.mxu1 %v2906_v7 }
 0x1e4   :  { %2117 = vmatpush1.bf16.msra.mxu0 %v2913_v15  ;;  %2149 = vmatpush1.bf16.msra.mxu1 %v2915_v18 }
 0x1e5   :  { %2119 = vmatprep.subr.bf16.mxu0 %v2924_v27  ;;  %2151 = vmatprep.subr.bf16.mxu1 %v2926_v28 }
 0x1e8   :  { %2121 = vmatpush1.bf16.msra.mxu0 %v2933_v29  ;;  %2153 = vmatpush1.bf16.msra.mxu1 %v2935_v30 }
 0x1e9   :  { %2155 = vmatprep.subr.bf16.mxu0 %v2786_v25  ;;  %2187 = vmatprep.subr.bf16.mxu1 %v2794_v31 }
 0x29e   :  { %v734_v12 = vpop.f32.mrb[2].mxu0  ;;  %v805_v13 = vpop.f32.mrb[2].mxu1 }
 0x29f   :  { %v1933_v14 = vmul.f32 -1.442695, %v734_v12  ;;  %v736_v19 = vpop.f32.mrb[3].mxu0  ;;  %v807_v20 = vpop.f32.mrb[3].mxu1 }
 0x2a0   :  { %v1934_v21 = vmul.f32 -1.442695, %v736_v19  ;;  %v1935_v22 = vmul.f32 -1.442695, %v807_v20 }
 0x2a1   :  { %2531 = vpow2.f32 %v1933_v14 }
 0x2a2   :  { %2533 = vpow2.f32 %v1934_v21 }
 0x2a3   :  { %2535 = vpow2.f32 %v1935_v22 }
 0x2a4   :  { %2537 = vtanh.f32 %v805_v13 }
 0x2ab   :  { %v2532_v26 = vpop.eup %2531 }
 0x2ac   :  { %v2534_v35 = vpop.eup %2533  ;;  %v817_v34 = vadd.f32 1.0, %v2532_v26 }
 0x2ad   :  { %v823_v36 = vadd.f32 1.0, %v2534_v35  ;;  %v2536_v37 = vpop.eup %2535 }
 0x2ae   :  { %2539 = vrcp.f32 %v817_v34  ;;  %v2538_v38 = vpop.eup %2537  ;;  %v830_v46 = vadd.f32 1.0, %v2536_v37 }
 0x2af   :  { %2541 = vrcp.f32 %v823_v36 }
 0x2b0   :  { %2543 = vrcp.f32 %v830_v46 }
 0x2b8   :  { %v2540_v39 = vpop.eup %2539 }
 0x2b9   :  { %v2542_v42 = vpop.eup %2541  ;;  %v834_v45 = vmul.f32 %v2540_v39, %v2538_v38 }
 0x2ba   :  { %v833_v47 = vmul.f32 %v2542_v42, %v2986_v4  ;;  %v2544_v53 = vpop.eup %2543 }
 0x2bc   :  { %v3024_v48 = vadd.f32 %v834_v45, %v833_v47 }
 0x2be   :  { %2545 = vtanh.f32 %v3024_v48 }
 0x2c8   :  { %v2546_v54 = vpop.eup %2545 }
 0x2c9   :  { %v837_v55 = vmul.f32 %v2546_v54, %v2544_v53 }
 0x2cb   :  { %907 = vmatmul.mubr.f32.vlgmr.msra.gmra.mrb[4].mxu0 %v837_v55  ;;  %978 = vmatmul.mubr.f32.vlgmr.msra.gmra.mrb[4].mxu1 %v837_v55 }
 0x2cc   :  { %2157 = vmatpush1.bf16.msra.mxu0 %v2800_v43  ;;  %2189 = vmatpush1.bf16.msra.mxu1 %v2802_v44 }
 0x2cd   :  { %2159 = vmatprep.subr.bf16.mxu0 %v2806_v50  ;;  %2191 = vmatprep.subr.bf16.mxu1 %v2808_v51 }
 0x2ce   :  { %1080 = vmatprep.mubr.f32.mxu0 %v2720_v1  ;;  %1151 = vmatprep.mubr.f32.mxu1 %v2720_v1 }
 0x2d0   :  { %2161 = vmatpush1.bf16.msra.mxu0 %v2814_v58  ;;  %2193 = vmatpush1.bf16.msra.mxu1 %v2816_v59 }
 0x2d1   :  { %2163 = vmatprep.subr.bf16.mxu0 %v2825_v2  ;;  %2195 = vmatprep.subr.bf16.mxu1 %v2827_v3 }
 0x2d4   :  { %2165 = vmatpush1.bf16.msra.mxu0 %v2836_v9  ;;  %2197 = vmatpush1.bf16.msra.mxu1 %v2838_v10 }
 0x2d5   :  { %2167 = vmatprep.subr.bf16.mxu0 %v2844_v16  ;;  %2199 = vmatprep.subr.bf16.mxu1 %v2846_v17 }
 0x2d8   :  { %2169 = vmatpush1.bf16.msra.mxu0 %v2853_v23  ;;  %2201 = vmatpush1.bf16.msra.mxu1 %v2855_v24 }
 0x2d9   :  { %2171 = vmatprep.subr.bf16.mxu0 %v2864_v32  ;;  %2203 = vmatprep.subr.bf16.mxu1 %v2866_v33 }
 0x2dc   :  { %2173 = vmatpush1.bf16.msra.mxu0 %v2873_v40  ;;  %2205 = vmatpush1.bf16.msra.mxu1 %v2875_v41 }
 0x2dd   :  { %2175 = vmatprep.subr.bf16.mxu0 %v2884_v49  ;;  %2207 = vmatprep.subr.bf16.mxu1 %v2886_v52 }
 0x2e0   :  { %2177 = vmatpush1.bf16.msra.mxu0 %v2893_v60  ;;  %2209 = vmatpush1.bf16.msra.mxu1 %v2895_v61 }
 0x2e1   :  { %2179 = vmatprep.subr.bf16.mxu0 %v2904_v6  ;;  %2211 = vmatprep.subr.bf16.mxu1 %v2906_v7 }
 0x2e4   :  { %2181 = vmatpush1.bf16.msra.mxu0 %v2913_v15  ;;  %2213 = vmatpush1.bf16.msra.mxu1 %v2915_v18 }
 0x2e5   :  { %2183 = vmatprep.subr.bf16.mxu0 %v2924_v27  ;;  %2215 = vmatprep.subr.bf16.mxu1 %v2926_v28 }
 0x2e8   :  { %2185 = vmatpush1.bf16.msra.mxu0 %v2933_v29  ;;  %2217 = vmatpush1.bf16.msra.mxu1 %v2935_v30 }
 0x2e9   :  { %2219 = vmatprep.subr.bf16.mxu0 %v2786_v25  ;;  %2251 = vmatprep.subr.bf16.mxu1 %v2794_v31 }
 0x39e   :  { %v908_v56 = vpop.f32.mrb[4].mxu0  ;;  %v979_v57 = vpop.f32.mrb[4].mxu1 }
 0x39f   :  { %v1936_v62 = vmul.f32 -1.442695, %v908_v56  ;;  %v910_v63 = vpop.f32.mrb[5].mxu0  ;;  %v981_v0 = vpop.f32.mrb[5].mxu1 }
 0x3a0   :  { %v1937_v4 = vmul.f32 -1.442695, %v910_v63  ;;  %v1938_v5 = vmul.f32 -1.442695, %v981_v0 }
 0x3a1   :  { %2547 = vpow2.f32 %v1936_v62 }
 0x3a2   :  { %2549 = vpow2.f32 %v1937_v4 }
 0x3a3   :  { %2551 = vpow2.f32 %v1938_v5 }
 0x3a4   :  { %2553 = vtanh.f32 %v979_v57 }
 0x3ab   :  { %v2548_v8 = vpop.eup %2547 }
 0x3ac   :  { %v2550_v11 = vpop.eup %2549  ;;  %v991_v12 = vadd.f32 1.0, %v2548_v8 }
 0x3ad   :  { %v997_v13 = vadd.f32 1.0, %v2550_v11  ;;  %v2552_v14 = vpop.eup %2551 }
 0x3ae   :  { %2555 = vrcp.f32 %v991_v12  ;;  %v2554_v19 = vpop.eup %2553  ;;  %v1004_v26 = vadd.f32 1.0, %v2552_v14 }
 0x3af   :  { %2557 = vrcp.f32 %v997_v13 }
 0x3b0   :  { %2559 = vrcp.f32 %v1004_v26 }
 0x3b8   :  { %v2556_v20 = vpop.eup %2555 }
 0x3b9   :  { %v2558_v21 = vpop.eup %2557  ;;  %v1008_v22 = vmul.f32 %v2556_v20, %v2554_v19 }
 0x3ba   :  { %v1007_v35 = vmul.f32 %v2558_v21, %v3024_v48  ;;  %v2560_v36 = vpop.eup %2559 }
 0x3bc   :  { %v3062_v34 = vadd.f32 %v1008_v22, %v1007_v35 }
 0x3be   :  { %2561 = vtanh.f32 %v3062_v34 }
 0x3c8   :  { %v2562_v37 = vpop.eup %2561 }
 0x3c9   :  { %v1011_v38 = vmul.f32 %v2562_v37, %v2560_v36 }
 0x3cb   :  { %1081 = vmatmul.mubr.f32.vlgmr.msra.gmra.mrb[6].mxu0 %v1011_v38  ;;  %1152 = vmatmul.mubr.f32.vlgmr.msra.gmra.mrb[6].mxu1 %v1011_v38 }
 0x3cc   :  { %2221 = vmatpush1.bf16.msra.mxu0 %v2800_v43  ;;  %2253 = vmatpush1.bf16.msra.mxu1 %v2802_v44 }
 0x3cd   :  { %2223 = vmatprep.subr.bf16.mxu0 %v2806_v50  ;;  %2255 = vmatprep.subr.bf16.mxu1 %v2808_v51 }
 0x3ce   :  { %1254 = vmatprep.mubr.f32.mxu0 %v2720_v1  ;;  %1325 = vmatprep.mubr.f32.mxu1 %v2720_v1 }
 0x3d0   :  { %2225 = vmatpush1.bf16.msra.mxu0 %v2814_v58  ;;  %2257 = vmatpush1.bf16.msra.mxu1 %v2816_v59 }
 0x3d1   :  { %2227 = vmatprep.subr.bf16.mxu0 %v2825_v2  ;;  %2259 = vmatprep.subr.bf16.mxu1 %v2827_v3 }
 0x3d4   :  { %2229 = vmatpush1.bf16.msra.mxu0 %v2836_v9  ;;  %2261 = vmatpush1.bf16.msra.mxu1 %v2838_v10 }
 0x3d5   :  { %2231 = vmatprep.subr.bf16.mxu0 %v2844_v16  ;;  %2263 = vmatprep.subr.bf16.mxu1 %v2846_v17 }
 0x3d8   :  { %2233 = vmatpush1.bf16.msra.mxu0 %v2853_v23  ;;  %2265 = vmatpush1.bf16.msra.mxu1 %v2855_v24 }
 0x3d9   :  { %2235 = vmatprep.subr.bf16.mxu0 %v2864_v32  ;;  %2267 = vmatprep.subr.bf16.mxu1 %v2866_v33 }
 0x3dc   :  { %2237 = vmatpush1.bf16.msra.mxu0 %v2873_v40  ;;  %2269 = vmatpush1.bf16.msra.mxu1 %v2875_v41 }
 0x3dd   :  { %2239 = vmatprep.subr.bf16.mxu0 %v2884_v49  ;;  %2271 = vmatprep.subr.bf16.mxu1 %v2886_v52 }
 0x3e0   :  { %2241 = vmatpush1.bf16.msra.mxu0 %v2893_v60  ;;  %2273 = vmatpush1.bf16.msra.mxu1 %v2895_v61 }
 0x3e1   :  { %2243 = vmatprep.subr.bf16.mxu0 %v2904_v6  ;;  %2275 = vmatprep.subr.bf16.mxu1 %v2906_v7 }
 0x3e4   :  { %2245 = vmatpush1.bf16.msra.mxu0 %v2913_v15  ;;  %2277 = vmatpush1.bf16.msra.mxu1 %v2915_v18 }
 0x3e5   :  { %2247 = vmatprep.subr.bf16.mxu0 %v2924_v27  ;;  %2279 = vmatprep.subr.bf16.mxu1 %v2926_v28 }
 0x3e8   :  { %2249 = vmatpush1.bf16.msra.mxu0 %v2933_v29  ;;  %2281 = vmatpush1.bf16.msra.mxu1 %v2935_v30 }
 0x3e9   :  { %2283 = vmatprep.subr.bf16.mxu0 %v2786_v25  ;;  %2315 = vmatprep.subr.bf16.mxu1 %v2794_v31 }
 0x49e   :  { %v1082_v39 = vpop.f32.mrb[6].mxu0  ;;  %v1153_v42 = vpop.f32.mrb[6].mxu1 }
 0x49f   :  { %v1939_v45 = vmul.f32 -1.442695, %v1082_v39  ;;  %v1084_v46 = vpop.f32.mrb[7].mxu0  ;;  %v1155_v47 = vpop.f32.mrb[7].mxu1 }
 0x4a0   :  { %v1940_v48 = vmul.f32 -1.442695, %v1084_v46  ;;  %v1941_v53 = vmul.f32 -1.442695, %v1155_v47 }
 0x4a1   :  { %2563 = vpow2.f32 %v1939_v45 }
 0x4a2   :  { %2565 = vpow2.f32 %v1940_v48 }
 0x4a3   :  { %2567 = vpow2.f32 %v1941_v53 }
 0x4a4   :  { %2569 = vtanh.f32 %v1153_v42 }
 0x4ab   :  { %v2564_v54 = vpop.eup %2563 }
 0x4ac   :  { %v2566_v55 = vpop.eup %2565  ;;  %v1165_v56 = vadd.f32 1.0, %v2564_v54 }
 0x4ad   :  { %v1171_v57 = vadd.f32 1.0, %v2566_v55  ;;  %v2568_v62 = vpop.eup %2567 }
 0x4ae   :  { %2571 = vrcp.f32 %v1165_v56  ;;  %v2570_v63 = vpop.eup %2569  ;;  %v1178_v8 = vadd.f32 1.0, %v2568_v62 }
 0x4af   :  { %2573 = vrcp.f32 %v1171_v57 }
 0x4b0   :  { %2575 = vrcp.f32 %v1178_v8 }
 0x4b8   :  { %v2572_v0 = vpop.eup %2571 }
 0x4b9   :  { %v2574_v4 = vpop.eup %2573  ;;  %v1182_v5 = vmul.f32 %v2572_v0, %v2570_v63 }
 0x4ba   :  { %v1181_v11 = vmul.f32 %v2574_v4, %v3062_v34  ;;  %v2576_v13 = vpop.eup %2575 }
 0x4bc   :  { %v3100_v12 = vadd.f32 %v1182_v5, %v1181_v11 }
 0x4be   :  { %2577 = vtanh.f32 %v3100_v12 }
 0x4c8   :  { %v2578_v14 = vpop.eup %2577 }
 0x4c9   :  { %v1185_v19 = vmul.f32 %v2578_v14, %v2576_v13 }
 0x4cb   :  { %1255 = vmatmul.mubr.f32.vlgmr.msra.gmra.mrb[8].mxu0 %v1185_v19  ;;  %1326 = vmatmul.mubr.f32.vlgmr.msra.gmra.mrb[8].mxu1 %v1185_v19 }
 0x4cc   :  { %2285 = vmatpush1.bf16.msra.mxu0 %v2800_v43  ;;  %2317 = vmatpush1.bf16.msra.mxu1 %v2802_v44 }
 0x4cd   :  { %2287 = vmatprep.subr.bf16.mxu0 %v2806_v50  ;;  %2319 = vmatprep.subr.bf16.mxu1 %v2808_v51 }
 0x4ce   :  { %1428 = vmatprep.mubr.f32.mxu0 %v2720_v1  ;;  %1499 = vmatprep.mubr.f32.mxu1 %v2720_v1 }
 0x4d0   :  { %2289 = vmatpush1.bf16.msra.mxu0 %v2814_v58  ;;  %2321 = vmatpush1.bf16.msra.mxu1 %v2816_v59 }
 0x4d1   :  { %2291 = vmatprep.subr.bf16.mxu0 %v2825_v2  ;;  %2323 = vmatprep.subr.bf16.mxu1 %v2827_v3 }
 0x4d4   :  { %2293 = vmatpush1.bf16.msra.mxu0 %v2836_v9  ;;  %2325 = vmatpush1.bf16.msra.mxu1 %v2838_v10 }
 0x4d5   :  { %2295 = vmatprep.subr.bf16.mxu0 %v2844_v16  ;;  %2327 = vmatprep.subr.bf16.mxu1 %v2846_v17 }
 0x4d8   :  { %2297 = vmatpush1.bf16.msra.mxu0 %v2853_v23  ;;  %2329 = vmatpush1.bf16.msra.mxu1 %v2855_v24 }
 0x4d9   :  { %2299 = vmatprep.subr.bf16.mxu0 %v2864_v32  ;;  %2331 = vmatprep.subr.bf16.mxu1 %v2866_v33 }
 0x4dc   :  { %2301 = vmatpush1.bf16.msra.mxu0 %v2873_v40  ;;  %2333 = vmatpush1.bf16.msra.mxu1 %v2875_v41 }
 0x4dd   :  { %2303 = vmatprep.subr.bf16.mxu0 %v2884_v49  ;;  %2335 = vmatprep.subr.bf16.mxu1 %v2886_v52 }
 0x4e0   :  { %2305 = vmatpush1.bf16.msra.mxu0 %v2893_v60  ;;  %2337 = vmatpush1.bf16.msra.mxu1 %v2895_v61 }
 0x4e1   :  { %2307 = vmatprep.subr.bf16.mxu0 %v2904_v6  ;;  %2339 = vmatprep.subr.bf16.mxu1 %v2906_v7 }
 0x4e4   :  { %2309 = vmatpush1.bf16.msra.mxu0 %v2913_v15  ;;  %2341 = vmatpush1.bf16.msra.mxu1 %v2915_v18 }
 0x4e5   :  { %2311 = vmatprep.subr.bf16.mxu0 %v2924_v27  ;;  %2343 = vmatprep.subr.bf16.mxu1 %v2926_v28 }
 0x4e8   :  { %2313 = vmatpush1.bf16.msra.mxu0 %v2933_v29  ;;  %2345 = vmatpush1.bf16.msra.mxu1 %v2935_v30 }
 0x4e9   :  { %2347 = vmatprep.subr.bf16.mxu0 %v2786_v25  ;;  %2379 = vmatprep.subr.bf16.mxu1 %v2794_v31 }
 0x59e   :  { %v1256_v20 = vpop.f32.mrb[8].mxu0  ;;  %v1327_v21 = vpop.f32.mrb[8].mxu1 }
 0x59f   :  { %v1942_v22 = vmul.f32 -1.442695, %v1256_v20  ;;  %v1258_v26 = vpop.f32.mrb[9].mxu0  ;;  %v1329_v35 = vpop.f32.mrb[9].mxu1 }
 0x5a0   :  { %v1943_v34 = vmul.f32 -1.442695, %v1258_v26  ;;  %v1944_v36 = vmul.f32 -1.442695, %v1329_v35 }
 0x5a1   :  { %2579 = vpow2.f32 %v1942_v22 }
 0x5a2   :  { %2581 = vpow2.f32 %v1943_v34 }
 0x5a3   :  { %2583 = vpow2.f32 %v1944_v36 }
 0x5a4   :  { %2585 = vtanh.f32 %v1327_v21 }
 0x5ab   :  { %v2580_v37 = vpop.eup %2579 }
 0x5ac   :  { %v2582_v38 = vpop.eup %2581  ;;  %v1339_v39 = vadd.f32 1.0, %v2580_v37 }
 0x5ad   :  { %v1345_v42 = vadd.f32 1.0, %v2582_v38  ;;  %v2584_v45 = vpop.eup %2583 }
 0x5ae   :  { %2587 = vrcp.f32 %v1339_v39  ;;  %v2586_v46 = vpop.eup %2585  ;;  %v1352_v54 = vadd.f32 1.0, %v2584_v45 }
 0x5af   :  { %2589 = vrcp.f32 %v1345_v42 }
 0x5b0   :  { %2591 = vrcp.f32 %v1352_v54 }
 0x5b8   :  { %v2588_v47 = vpop.eup %2587 }
 0x5b9   :  { %v2590_v48 = vpop.eup %2589  ;;  %v1356_v53 = vmul.f32 %v2588_v47, %v2586_v46 }
 0x5ba   :  { %v1355_v55 = vmul.f32 %v2590_v48, %v3100_v12  ;;  %v2592_v57 = vpop.eup %2591 }
 0x5bc   :  { %v3138_v56 = vadd.f32 %v1356_v53, %v1355_v55 }
 0x5be   :  { %2593 = vtanh.f32 %v3138_v56 }
 0x5c8   :  { %v2594_v62 = vpop.eup %2593 }
 0x5c9   :  { %v1359_v63 = vmul.f32 %v2594_v62, %v2592_v57 }
 0x5cb   :  { %1429 = vmatmul.mubr.f32.vlgmr.msra.gmra.mrb[10].mxu0 %v1359_v63  ;;  %1500 = vmatmul.mubr.f32.vlgmr.msra.gmra.mrb[10].mxu1 %v1359_v63 }
 0x5cc   :  { %2349 = vmatpush1.bf16.msra.mxu0 %v2800_v43  ;;  %2381 = vmatpush1.bf16.msra.mxu1 %v2802_v44 }
 0x5cd   :  { %2351 = vmatprep.subr.bf16.mxu0 %v2806_v50  ;;  %2383 = vmatprep.subr.bf16.mxu1 %v2808_v51 }
 0x5ce   :  { %1602 = vmatprep.mubr.f32.mxu0 %v2720_v1  ;;  %1673 = vmatprep.mubr.f32.mxu1 %v2720_v1 }
 0x5d0   :  { %2353 = vmatpush1.bf16.msra.mxu0 %v2814_v58  ;;  %2385 = vmatpush1.bf16.msra.mxu1 %v2816_v59 }
 0x5d1   :  { %2355 = vmatprep.subr.bf16.mxu0 %v2825_v2  ;;  %2387 = vmatprep.subr.bf16.mxu1 %v2827_v3 }
 0x5d4   :  { %2357 = vmatpush1.bf16.msra.mxu0 %v2836_v9  ;;  %2389 = vmatpush1.bf16.msra.mxu1 %v2838_v10 }
 0x5d5   :  { %2359 = vmatprep.subr.bf16.mxu0 %v2844_v16  ;;  %2391 = vmatprep.subr.bf16.mxu1 %v2846_v17 }
 0x5d8   :  { %2361 = vmatpush1.bf16.msra.mxu0 %v2853_v23  ;;  %2393 = vmatpush1.bf16.msra.mxu1 %v2855_v24 }
 0x5d9   :  { %2363 = vmatprep.subr.bf16.mxu0 %v2864_v32  ;;  %2395 = vmatprep.subr.bf16.mxu1 %v2866_v33 }
 0x5dc   :  { %2365 = vmatpush1.bf16.msra.mxu0 %v2873_v40  ;;  %2397 = vmatpush1.bf16.msra.mxu1 %v2875_v41 }
 0x5dd   :  { %2367 = vmatprep.subr.bf16.mxu0 %v2884_v49  ;;  %2399 = vmatprep.subr.bf16.mxu1 %v2886_v52 }
 0x5e0   :  { %2369 = vmatpush1.bf16.msra.mxu0 %v2893_v60  ;;  %2401 = vmatpush1.bf16.msra.mxu1 %v2895_v61 }
 0x5e1   :  { %2371 = vmatprep.subr.bf16.mxu0 %v2904_v6  ;;  %2403 = vmatprep.subr.bf16.mxu1 %v2906_v7 }
 0x5e4   :  { %2373 = vmatpush1.bf16.msra.mxu0 %v2913_v15  ;;  %2405 = vmatpush1.bf16.msra.mxu1 %v2915_v18 }
 0x5e5   :  { %2375 = vmatprep.subr.bf16.mxu0 %v2924_v27  ;;  %2407 = vmatprep.subr.bf16.mxu1 %v2926_v28 }
 0x5e8   :  { %2377 = vmatpush1.bf16.msra.mxu0 %v2933_v29  ;;  %2409 = vmatpush1.bf16.msra.mxu1 %v2935_v30 }
 0x5e9   :  { %2411 = vmatprep.subr.bf16.mxu0 %v2786_v25  ;;  %2443 = vmatprep.subr.bf16.mxu1 %v2794_v31 }
 0x69e   :  { %v1430_v0 = vpop.f32.mrb[10].mxu0  ;;  %v1501_v4 = vpop.f32.mrb[10].mxu1 }
 0x69f   :  { %v1945_v5 = vmul.f32 -1.442695, %v1430_v0  ;;  %v1432_v8 = vpop.f32.mrb[11].mxu0  ;;  %v1503_v11 = vpop.f32.mrb[11].mxu1 }
 0x6a0   :  { %v1946_v12 = vmul.f32 -1.442695, %v1432_v8  ;;  %v1947_v13 = vmul.f32 -1.442695, %v1503_v11 }
 0x6a1   :  { %2595 = vpow2.f32 %v1945_v5 }
 0x6a2   :  { %2597 = vpow2.f32 %v1946_v12 }
 0x6a3   :  { %2599 = vpow2.f32 %v1947_v13 }
 0x6a4   :  { %2601 = vtanh.f32 %v1501_v4 }
 0x6ab   :  { %v2596_v14 = vpop.eup %2595 }
 0x6ac   :  { %v2598_v19 = vpop.eup %2597  ;;  %v1513_v20 = vadd.f32 1.0, %v2596_v14 }
 0x6ad   :  { %v1519_v21 = vadd.f32 1.0, %v2598_v19  ;;  %v2600_v25 = vpop.eup %2599 }
 0x6ae   :  { %2603 = vrcp.f32 %v1513_v20  ;;  %v2602_v22 = vpop.eup %2601  ;;  %v1526_v34 = vadd.f32 1.0, %v2600_v25 }
 0x6af   :  { %2605 = vrcp.f32 %v1519_v21 }
 0x6b0   :  { %2607 = vrcp.f32 %v1526_v34 }
 0x6b8   :  { %v2604_v31 = vpop.eup %2603 }
 0x6b9   :  { %v2606_v26 = vpop.eup %2605  ;;  %v1530_v35 = vmul.f32 %v2604_v31, %v2602_v22 }
 0x6ba   :  { %v1529_v36 = vmul.f32 %v2606_v26, %v3138_v56  ;;  %v2608_v38 = vpop.eup %2607 }
 0x6bc   :  { %v3176_v37 = vadd.f32 %v1530_v35, %v1529_v36 }
 0x6be   :  { %2609 = vtanh.f32 %v3176_v37 }
 0x6c8   :  { %v2610_v39 = vpop.eup %2609 }
 0x6c9   :  { %v1533_v42 = vmul.f32 %v2610_v39, %v2608_v38 }
 0x6cb   :  { %1603 = vmatmul.mubr.f32.vlgmr.msra.gmra.mrb[12].mxu0 %v1533_v42  ;;  %1674 = vmatmul.mubr.f32.vlgmr.msra.gmra.mrb[12].mxu1 %v1533_v42 }
 0x6cc   :  { %2413 = vmatpush1.bf16.msra.mxu0 %v2800_v43  ;;  %2445 = vmatpush1.bf16.msra.mxu1 %v2802_v44 }
 0x6cd   :  { %2415 = vmatprep.subr.bf16.mxu0 %v2806_v50  ;;  %2447 = vmatprep.subr.bf16.mxu1 %v2808_v51 }
 0x6ce   :  { %1776 = vmatprep.mubr.f32.mxu0 %v2720_v1  ;;  %1847 = vmatprep.mubr.f32.mxu1 %v2720_v1 }
 0x6d0   :  { %2417 = vmatpush1.bf16.msra.mxu0 %v2814_v58  ;;  %2449 = vmatpush1.bf16.msra.mxu1 %v2816_v59 }
 0x6d1   :  { %2419 = vmatprep.subr.bf16.mxu0 %v2825_v2  ;;  %2451 = vmatprep.subr.bf16.mxu1 %v2827_v3 }
 0x6d4   :  { %2421 = vmatpush1.bf16.msra.mxu0 %v2836_v9  ;;  %2453 = vmatpush1.bf16.msra.mxu1 %v2838_v10 }
 0x6d5   :  { %2423 = vmatprep.subr.bf16.mxu0 %v2844_v16  ;;  %2455 = vmatprep.subr.bf16.mxu1 %v2846_v17 }
 0x6d8   :  { %2425 = vmatpush1.bf16.msra.mxu0 %v2853_v23  ;;  %2457 = vmatpush1.bf16.msra.mxu1 %v2855_v24 }
 0x6d9   :  { %2427 = vmatprep.subr.bf16.mxu0 %v2864_v32  ;;  %2459 = vmatprep.subr.bf16.mxu1 %v2866_v33 }
 0x6dc   :  { %2429 = vmatpush1.bf16.msra.mxu0 %v2873_v40  ;;  %2461 = vmatpush1.bf16.msra.mxu1 %v2875_v41 }
 0x6dd   :  { %2431 = vmatprep.subr.bf16.mxu0 %v2884_v49  ;;  %2463 = vmatprep.subr.bf16.mxu1 %v2886_v52 }
 0x6e0   :  { %2433 = vmatpush1.bf16.msra.mxu0 %v2893_v60  ;;  %2465 = vmatpush1.bf16.msra.mxu1 %v2895_v61 }
 0x6e1   :  { %2435 = vmatprep.subr.bf16.mxu0 %v2904_v6  ;;  %2467 = vmatprep.subr.bf16.mxu1 %v2906_v7 }
 0x6e4   :  { %2437 = vmatpush1.bf16.msra.mxu0 %v2913_v15  ;;  %2469 = vmatpush1.bf16.msra.mxu1 %v2915_v18 }
 0x6e5   :  { %2439 = vmatprep.subr.bf16.mxu0 %v2924_v27  ;;  %2471 = vmatprep.subr.bf16.mxu1 %v2926_v28 }
 0x6e8   :  { %2441 = vmatpush1.bf16.msra.mxu0 %v2933_v29  ;;  %2473 = vmatpush1.bf16.msra.mxu1 %v2935_v30 }
 0x79e   :  { %v1604_v1 = vpop.f32.mrb[12].mxu0  ;;  %v1675_v43 = vpop.f32.mrb[12].mxu1 }
 0x79f   :  { %v1948_v44 = vmul.f32 -1.442695, %v1604_v1  ;;  %v1606_v50 = vpop.f32.mrb[13].mxu0  ;;  %v1677_v51 = vpop.f32.mrb[13].mxu1 }
 0x7a0   :  { %v1949_v58 = vmul.f32 -1.442695, %v1606_v50  ;;  %v1950_v59 = vmul.f32 -1.442695, %v1677_v51 }
 0x7a1   :  { %2611 = vpow2.f32 %v1948_v44 }
 0x7a2   :  { %2613 = vpow2.f32 %v1949_v58 }
 0x7a3   :  { %2615 = vpow2.f32 %v1950_v59 }
 0x7a4   :  { %2617 = vtanh.f32 %v1675_v43 }
 0x7ab   :  { %v2612_v2 = vpop.eup %2611 }
 0x7ac   :  { %v2614_v3 = vpop.eup %2613  ;;  %v1687_v9 = vadd.f32 1.0, %v2612_v2 }
 0x7ad   :  { %v1693_v10 = vadd.f32 1.0, %v2614_v3  ;;  %v2616_v16 = vpop.eup %2615 }
 0x7ae   :  { %2619 = vrcp.f32 %v1687_v9  ;;  %v2618_v17 = vpop.eup %2617  ;;  %v1700_v33 = vadd.f32 1.0, %v2616_v16 }
 0x7af   :  { %2621 = vrcp.f32 %v1693_v10 }
 0x7b0   :  { %2623 = vrcp.f32 %v1700_v33 }
 0x7b8   :  { %v2620_v23 = vpop.eup %2619 }
 0x7b9   :  { %v2622_v24 = vpop.eup %2621  ;;  %v1704_v32 = vmul.f32 %v2620_v23, %v2618_v17 }
 0x7ba   :  { %v1703_v40 = vmul.f32 %v2622_v24, %v3176_v37  ;;  %v2624_v49 = vpop.eup %2623 }
 0x7bc   :  { %v1705_v41 = vadd.f32 %v1704_v32, %v1703_v40 }
 0x7be   :  { %2625 = vtanh.f32 %v1705_v41 }
 0x7c8   :  { %v2626_v52 = vpop.eup %2625 }
 0x7c9   :  { %v1707_v60 = vmul.f32 %v2626_v52, %v2624_v49 }
 0x7cb   :  { %1777 = vmatmul.mubr.f32.vlgmr.msra.gmra.mrb[14].mxu0 %v1707_v60  ;;  %1848 = vmatmul.mubr.f32.vlgmr.msra.gmra.mrb[14].mxu1 %v1707_v60 }
 0x89e   :  { %v1778_v61 = vpop.f32.mrb[14].mxu0  ;;  %v1849_v6 = vpop.f32.mrb[14].mxu1 }
 0x89f   :  { %v1951_v7 = vmul.f32 -1.442695, %v1778_v61  ;;  %v1780_v15 = vpop.f32.mrb[15].mxu0  ;;  %v1851_v18 = vpop.f32.mrb[15].mxu1 }
 0x8a0   :  { %v1952_v27 = vmul.f32 -1.442695, %v1780_v15  ;;  %v1953_v28 = vmul.f32 -1.442695, %v1851_v18 }
 0x8a1   :  { %2627 = vpow2.f32 %v1951_v7 }
 0x8a2   :  { %2629 = vpow2.f32 %v1952_v27 }
 0x8a3   :  { %2631 = vpow2.f32 %v1953_v28 }
 0x8a4   :  { %2633 = vtanh.f32 %v1849_v6 }
 0x8ab   :  { %v2628_v29 = vpop.eup %2627 }
 0x8ac   :  { %v2630_v30 = vpop.eup %2629  ;;  %v1861_v45 = vadd.f32 1.0, %v2628_v29 }
 0x8ad   :  { %v1867_v46 = vadd.f32 1.0, %v2630_v30  ;;  %v2632_v47 = vpop.eup %2631 }
 0x8ae   :  { %2635 = vrcp.f32 %v1861_v45  ;;  %v2634_v48 = vpop.eup %2633  ;;  %v1874_v56 = vadd.f32 1.0, %v2632_v47 }
 0x8af   :  { %2637 = vrcp.f32 %v1867_v46 }
 0x8b0   :  { %2639 = vrcp.f32 %v1874_v56 }
 0x8b8   :  { %v2636_v53 = vpop.eup %2635 }
 0x8b9   :  { %v2638_v54 = vpop.eup %2637  ;;  %v1878_v55 = vmul.f32 %v2636_v53, %v2634_v48 }
 0x8ba   :  { %v1877_v57 = vmul.f32 %v2638_v54, %v1705_v41  ;;  %v2640_v63 = vpop.eup %2639 }
 0x8bc   :  { %v1879_v62 = vadd.f32 %v1878_v55, %v1877_v57 }
 0x8be   :  { %2641 = vtanh.f32 %v1879_v62 }
 0x8c8   :  { %v2642_v0 = vpop.eup %2641 }
 0x8c9   :  { %v1881_v4 = vmul.f32 %v2642_v0, %v2640_v63 }
 0x8cb   :  { %1882 = vst [vmem:[#allocation9] sm:$0xff] %v1881_v4 }
 0x8cc   :  { %2698 = shalt.err (!%p2695_p6)
}
 0x8cd   :  { %s2699_s29 = scalar_lea.hbm %s3227_s3, 128 }
 0x8ce   :  { %p2700_p7 = scmp.ne.s32.totalorder %s3227_s3, %s2699_s29  ;;  %p2703_p8 = scmp.lt.u32.totalorder %s2699_s29, %s3227_s3 }
 0x8d0   :  { %p2705_p9 = pnand %p2703_p8, %p2700_p7 }
 0x8d2   :  { %2708 = shalt.err (!%p2705_p9)
}
 0x8d3   :  { %1893 = dma.vmem_to_hbm [thread:$0]  %s1891_s25, 128, %s3227_s3, [#allocation6]  }
 0x8d4   :  { %2713 = dma.done.wait [#allocation6], 128  }
 0x8d5   :  { %2714 = vsyncadd [#allocation6], 4294967168 }
 0x8d6   :  { %1897 = vsyncpa [#allocation5], 1 }
 0x8d7   :  { %1898 = vsyncpa [#allocation8], 1 }
 0x8d8   :  { %1899 = vsyncpa [#allocation6], 1 }

</bundles_post_ra>
